<compile_context>
chip_gen: v6e
topology: v6e:2x2x1
jax: 0.10.0
libtpu: 0.0.40
codegen_flags: <defaults>
</compile_context>

<pallas_src>
import functools

import jax
import jax.numpy as jnp
from jax.experimental import pallas as pl
from jax.experimental.pallas import tpu as pltpu


def padded_z_dim(z_dim):
    """Pad the latent width to a full 128-lane multiple (>= 128)."""
    return max(128, ((z_dim + 127) // 128) * 128)


def vae_elbo_kernel(x_ref, eps_ref,
                    w1_ref, b1_ref,
                    wmusg_ref, bmusg_ref,
                    wd1_ref, bd1_ref,
                    wd2_ref, bd2_ref,
                    out_ref):
    x = x_ref[...]          # f32 [bchunk, X]
    eps = eps_ref[...]      # f32 [bchunk, ZP]  (lanes >= z_dim are don't-care)
    zp = eps.shape[-1]

    # ---- Encoder: h = tanh(x @ W1 + b1) ----
    h = jnp.tanh(
        jnp.dot(x.astype(jnp.bfloat16), w1_ref[...],
                preferred_element_type=jnp.float32) + b1_ref[...]
    )

    # Fused, lane-aligned mu / log-var heads: one matmul producing [bchunk, 2*ZP].
    musg = (
        jnp.dot(h.astype(jnp.bfloat16), wmusg_ref[...],
                preferred_element_type=jnp.float32) + bmusg_ref[...]
    )
    mu = musg[:, :zp]        # lane offset 0   -> vreg-aligned slice
    s = musg[:, zp:]         # lane offset 128 -> vreg-aligned slice; s = log(sigma^2)

    # ---- Reparameterization: sigma = exp(0.5*s) (== sqrt(exp(s)), overflow-safe) ----
    sigma = jnp.exp(0.5 * s)
    z = sigma * eps + mu     # padded lanes flow into zero rows of wd1 -> contribute 0

    # ---- Decoder (keep logits; sigmoid folded into the logits-space likelihood) ----
    hd = jnp.tanh(
        jnp.dot(z.astype(jnp.bfloat16), wd1_ref[...],
                preferred_element_type=jnp.float32) + bd1_ref[...]
    )
    logits = (
        jnp.dot(hd.astype(jnp.bfloat16), wd2_ref[...],
                preferred_element_type=jnp.float32) + bd2_ref[...]
    )

    # ---- ELBO terms ----
    # KL: 0.5*(sigma^2 + mu^2 - 1 - s); padded lanes give exactly 0 (sigma=1, mu=0, s=0).
    l_reg = 0.5 * (sigma * sigma + mu * mu - 1.0 - s)
    # Bernoulli log-likelihood in logits space: x*logits - softplus(logits).
    softplus = jnp.maximum(logits, 0.0) + jnp.log(1.0 + jnp.exp(-jnp.abs(logits)))
    l_recon = x * logits - softplus

    # Single-stage scalar reduction per chunk (no [B,1] intermediate).
    partial = jnp.sum(l_reg) - jnp.sum(l_recon)
    # Full (8,128) tile write: unmasked store, distinct block per program (parallel-safe).
    out_ref[...] = jnp.broadcast_to(partial, out_ref.shape).astype(jnp.float32)


def vae_forward(x, eps, kparams, *, num_chunks=2):
    """Negative average ELBO. `kparams` must come from prepare_kernel_params."""
    (w1, b1, wmusg, bmusg, wd1, bd1, wd2, bd2) = kparams
    B, X = x.shape
    ZP = eps.shape[1]
    H = w1.shape[1]
    assert B % num_chunks == 0
    bchunk = B // num_chunks
    assert bchunk % 8 == 0, "batch chunk must be a multiple of 8 sublanes"

    flops = 2 * B * (X * H + H * 2 * ZP + ZP * H + H * X)
    transcendentals = B * (2 * H + ZP + 2 * X)
    bytes_accessed = sum(int(a.size) * a.dtype.itemsize
                         for a in (x, eps, w1, b1, wmusg, bmusg, wd1, bd1, wd2, bd2))
    bytes_accessed += num_chunks * 8 * 128 * 4

    out = pl.pallas_call(
        vae_elbo_kernel,
        out_shape=jax.ShapeDtypeStruct((num_chunks, 8, 128), jnp.float32),
        grid=(num_chunks,),
        in_specs=[
            pl.BlockSpec((bchunk, X), lambda i: (i, 0)),    # x (batch-sharded)
            pl.BlockSpec((bchunk, ZP), lambda i: (i, 0)),   # eps (batch-sharded)
            pl.BlockSpec(w1.shape, lambda i: (0, 0)),       # weights: constant block
            pl.BlockSpec(b1.shape, lambda i: (0, 0)),       #   index -> no re-DMA
            pl.BlockSpec(wmusg.shape, lambda i: (0, 0)),
            pl.BlockSpec(bmusg.shape, lambda i: (0, 0)),
            pl.BlockSpec(wd1.shape, lambda i: (0, 0)),
            pl.BlockSpec(bd1.shape, lambda i: (0, 0)),
            pl.BlockSpec(wd2.shape, lambda i: (0, 0)),
            pl.BlockSpec(bd2.shape, lambda i: (0, 0)),
        ],
        out_specs=pl.BlockSpec((1, 8, 128), lambda i: (i, 0, 0)),
        compiler_params=pltpu.CompilerParams(
            dimension_semantics=("parallel",)),             # megacore on v7x
        cost_estimate=pl.CostEstimate(flops=flops,
                                      transcendentals=transcendentals,
                                      bytes_accessed=bytes_accessed),
    )(x, eps, w1, b1, wmusg, bmusg, wd1, bd1, wd2, bd2)

    # Finish the batch mean on the tiny (num_chunks,) vector of partial sums.
    return jnp.sum(out[:, 0, 0]) / B


def init_params(key, x_dim, hidden_dim, z_dim):
    """Deterministic init mimicking torch.nn.Linear (uniform +/- 1/sqrt(fan_in)).
    Weights are (in, out); biases are (1, out). Stored in f32 (raw / PyTorch-style)."""
    def linear(key, fan_in, fan_out):
        kw, kb = jax.random.split(key)
        bound = 1.0 / jnp.sqrt(fan_in)
        w = jax.random.uniform(kw, (fan_in, fan_out), jnp.float32, -bound, bound)
        b = jax.random.uniform(kb, (1, fan_out), jnp.float32, -bound, bound)
        return w, b

    keys = jax.random.split(key, 5)
    w1, b1 = linear(keys[0], x_dim, hidden_dim)        # encoder.h
    wmu, bmu = linear(keys[1], hidden_dim, z_dim)      # encoder.mu
    wsg, bsg = linear(keys[2], hidden_dim, z_dim)      # encoder.sigma (pre-exp)
    wd1, bd1 = linear(keys[3], z_dim, hidden_dim)      # decoder layer 1
    wd2, bd2 = linear(keys[4], hidden_dim, x_dim)      # decoder layer 2
    return (w1, b1, wmu, bmu, wsg, bsg, wd1, bd1, wd2, bd2)


def prepare_kernel_params(params):
    """One-time (init / param-update time) conversion of raw params into kernel params:
    fuse + zero-pad the mu/log-var heads to 128-lane blocks, zero-pad the decoder
    input rows to match, and cast matmul weights to bf16. Padding is exactly zero,
    so the padded lanes contribute exactly 0 to the KL term and the decoder matmul."""
    (w1, b1, wmu, bmu, wsg, bsg, wd1, bd1, wd2, bd2) = params
    hidden = w1.shape[1]
    z_dim = wmu.shape[1]
    zp = padded_z_dim(z_dim)

    def pad_cols(a, width):
        return jnp.zeros((a.shape[0], width), a.dtype).at[:, :a.shape[1]].set(a)

    wmusg = jnp.concatenate([pad_cols(wmu, zp), pad_cols(wsg, zp)], axis=1)  # [H, 2*ZP]
    bmusg = jnp.concatenate([pad_cols(bmu, zp), pad_cols(bsg, zp)], axis=1)  # [1, 2*ZP]
    wd1_p = jnp.zeros((zp, hidden), wd1.dtype).at[:z_dim, :].set(wd1)        # [ZP, H]

    bf16 = lambda w: w.astype(jnp.bfloat16)
    return (bf16(w1), b1, bf16(wmusg), bmusg, bf16(wd1_p), bd1, bf16(wd2), bd2)


def reference_forward_matched(x, eps, params):
    """Same math as the original PyTorch module, with matmul inputs cast to bf16
    exactly like the kernel (so the comparison is tight)."""
    (w1, b1, wmu, bmu, wsg, bsg, wd1, bd1, wd2, bd2) = params
    bf = jnp.bfloat16
    dot = lambda a, w: jnp.dot(a.astype(bf), w.astype(bf),
                               preferred_element_type=jnp.float32)
    h = jnp.tanh(dot(x, w1) + b1)
    mu = dot(h, wmu) + bmu
    sigma = jnp.sqrt(jnp.exp(dot(h, wsg) + bsg))
    z = sigma * eps + mu
    y = jax.nn.sigmoid(dot(jnp.tanh(dot(z, wd1) + bd1), wd2) + bd2)
    l_reg = 0.5 * (sigma**2 + mu**2 - 1.0 - jnp.log(sigma**2))
    l_recon = x * jnp.log(y) + (1.0 - x) * jnp.log(1.0 - y)
    return jnp.mean(jnp.sum(l_reg, -1) - jnp.sum(l_recon, -1))


def reference_forward_f32(x, eps, params):
    """Pure f32 reference (exact original semantics), used as a loose sanity check."""
    (w1, b1, wmu, bmu, wsg, bsg, wd1, bd1, wd2, bd2) = params
    h = jnp.tanh(x @ w1 + b1)
    mu = h @ wmu + bmu
    sigma = jnp.sqrt(jnp.exp(h @ wsg + bsg))
    z = sigma * eps + mu
    y = jax.nn.sigmoid(jnp.tanh(z @ wd1 + bd1) @ wd2 + bd2)
    l_reg = 0.5 * (sigma**2 + mu**2 - 1.0 - jnp.log(sigma**2))
    l_recon = x * jnp.log(y) + (1.0 - x) * jnp.log(1.0 - y)
    return jnp.mean(jnp.sum(l_reg, -1) - jnp.sum(l_recon, -1))


if __name__ == "__main__":
    # Small shapes consistent with the module (MNIST-style VAE, scaled down).
    batch, x_dim, hidden_dim, z_dim = 128, 256, 128, 32
    zp = padded_z_dim(z_dim)

    key = jax.random.PRNGKey(0)
    k_params, k_x, k_eps = jax.random.split(key, 3)

    params = init_params(k_params, x_dim, hidden_dim, z_dim)
    # One-time param prep (fuse/pad/cast) -- hoisted out of the per-call forward.
    kparams = prepare_kernel_params(params)

    # Pixel intensities strictly inside (0,1) so the f32 reference's log(y)/log(1-y)
    # is finite; the kernel's logits-space likelihood is safe regardless.
    x = jax.random.uniform(k_x, (batch, x_dim), jnp.float32, 0.01, 0.99)
    # eps plays the role of torch.randn_like(mu); generated host-side at the padded
    # lane width (extra lanes mathematically cannot influence the result), and the
    # first z_dim columns are shared with the references.
    eps_full = jax.random.normal(k_eps, (batch, zp), jnp.float32)
    eps = eps_full[:, :z_dim]

    fwd = jax.jit(functools.partial(vae_forward, num_chunks=2))
    elbo = fwd(x, eps_full, kparams)
    jax.block_until_ready(elbo)

    ref_matched = reference_forward_matched(x, eps, params)
    ref_f32 = reference_forward_f32(x, eps, params)

    # Tight check against the bf16-matmul reference (same arithmetic path).
    assert jnp.allclose(elbo, ref_matched, rtol=2e-3, atol=5e-2), (elbo, ref_matched)
    # Loose sanity check against the exact f32 semantics of the original module.
    assert jnp.allclose(elbo, ref_f32, rtol=5e-2, atol=1.0), (elbo, ref_f32)

    print("KERNEL_OK")
</pallas_src>

<mosaic_0001>
module attributes {stable_mosaic.version = 11 : i64} {
  func.func @vae_elbo_kernel(%arg0: i32, %arg1: memref<64x256xf32, #tpu.memory_space<vmem>>, %arg2: memref<64x128xf32, #tpu.memory_space<vmem>>, %arg3: memref<256x128xbf16, #tpu.memory_space<vmem>>, %arg4: memref<1x128xf32, #tpu.memory_space<vmem>>, %arg5: memref<128x256xbf16, #tpu.memory_space<vmem>>, %arg6: memref<1x256xf32, #tpu.memory_space<vmem>>, %arg7: memref<128x128xbf16, #tpu.memory_space<vmem>>, %arg8: memref<1x128xf32, #tpu.memory_space<vmem>>, %arg9: memref<128x256xbf16, #tpu.memory_space<vmem>>, %arg10: memref<1x256xf32, #tpu.memory_space<vmem>>, %arg11: memref<1x8x128xf32, #tpu.memory_space<vmem>>) attributes {dimension_semantics = [#tpu.dimension_semantics<parallel>], iteration_bounds = array<i64: 2>, scalar_prefetch = 0 : i64, scratch_operands = 0 : i64, tpu.core_type = #tpu.core_type<tc>, window_params = [{transform_indices = @transform_0, window_bounds = array<i64: 64, 256>}, {transform_indices = @transform_1, window_bounds = array<i64: 64, 128>}, {pipeline_mode = #tpu.pipeline_mode<synchronous>, transform_indices = @transform_2, window_bounds = array<i64: 256, 128>}, {pipeline_mode = #tpu.pipeline_mode<synchronous>, transform_indices = @transform_3, window_bounds = array<i64: 1, 128>}, {pipeline_mode = #tpu.pipeline_mode<synchronous>, transform_indices = @transform_4, window_bounds = array<i64: 128, 256>}, {pipeline_mode = #tpu.pipeline_mode<synchronous>, transform_indices = @transform_5, window_bounds = array<i64: 1, 256>}, {pipeline_mode = #tpu.pipeline_mode<synchronous>, transform_indices = @transform_6, window_bounds = array<i64: 128, 128>}, {pipeline_mode = #tpu.pipeline_mode<synchronous>, transform_indices = @transform_7, window_bounds = array<i64: 1, 128>}, {pipeline_mode = #tpu.pipeline_mode<synchronous>, transform_indices = @transform_8, window_bounds = array<i64: 128, 256>}, {pipeline_mode = #tpu.pipeline_mode<synchronous>, transform_indices = @transform_9, window_bounds = array<i64: 1, 256>}, {transform_indices = @transform_10, window_bounds = array<i64: 1, 8, 128>}]} {
    %c0 = arith.constant 0 : index
    %c0_0 = arith.constant 0 : index
    %0 = vector.load %arg1[%c0, %c0_0] : memref<64x256xf32, #tpu.memory_space<vmem>>, vector<64x256xf32>
    %c0_1 = arith.constant 0 : index
    %c0_2 = arith.constant 0 : index
    %1 = vector.load %arg2[%c0_1, %c0_2] : memref<64x128xf32, #tpu.memory_space<vmem>>, vector<64x128xf32>
    %2 = arith.truncf %0 : vector<64x256xf32> to vector<64x256xbf16>
    %c0_3 = arith.constant 0 : index
    %c0_4 = arith.constant 0 : index
    %3 = vector.load %arg3[%c0_3, %c0_4] : memref<256x128xbf16, #tpu.memory_space<vmem>>, vector<256x128xbf16>
    %cst = arith.constant dense<0.000000e+00> : vector<64x128xf32>
    %4 = tpu.matmul %2, %3, %cst {dimension_numbers = #tpu.dot_dimension_numbers<[1], [0], [0], [1], [0, 0, 1, 1], [], []>} : vector<64x256xbf16>, vector<256x128xbf16>, vector<64x128xf32> -> vector<64x128xf32>
    %c0_5 = arith.constant 0 : index
    %c0_6 = arith.constant 0 : index
    %5 = vector.load %arg4[%c0_5, %c0_6] : memref<1x128xf32, #tpu.memory_space<vmem>>, vector<1x128xf32>
    %6 = vector.broadcast %5 : vector<1x128xf32> to vector<64x128xf32>
    %7 = arith.addf %4, %6 : vector<64x128xf32>
    %8 = math.tanh %7 : vector<64x128xf32>
    %9 = arith.truncf %8 : vector<64x128xf32> to vector<64x128xbf16>
    %c0_7 = arith.constant 0 : index
    %c0_8 = arith.constant 0 : index
    %10 = vector.load %arg5[%c0_7, %c0_8] : memref<128x256xbf16, #tpu.memory_space<vmem>>, vector<128x256xbf16>
    %cst_9 = arith.constant dense<0.000000e+00> : vector<64x256xf32>
    %11 = tpu.matmul %9, %10, %cst_9 {dimension_numbers = #tpu.dot_dimension_numbers<[1], [0], [0], [1], [0, 0, 1, 1], [], []>} : vector<64x128xbf16>, vector<128x256xbf16>, vector<64x256xf32> -> vector<64x256xf32>
    %c0_10 = arith.constant 0 : index
    %c0_11 = arith.constant 0 : index
    %12 = vector.load %arg6[%c0_10, %c0_11] : memref<1x256xf32, #tpu.memory_space<vmem>>, vector<1x256xf32>
    %13 = vector.broadcast %12 : vector<1x256xf32> to vector<64x256xf32>
    %14 = arith.addf %11, %13 : vector<64x256xf32>
    %15 = vector.extract_strided_slice %14 {offsets = [0, 0], sizes = [64, 128], strides = [1, 1]} : vector<64x256xf32> to vector<64x128xf32>
    %16 = vector.extract_strided_slice %14 {offsets = [0, 128], sizes = [64, 128], strides = [1, 1]} : vector<64x256xf32> to vector<64x128xf32>
    %cst_12 = arith.constant 5.000000e-01 : f32
    %17 = vector.broadcast %cst_12 : f32 to vector<64x128xf32>
    %18 = arith.mulf %17, %16 : vector<64x128xf32>
    %19 = math.exp %18 : vector<64x128xf32>
    %20 = arith.mulf %19, %1 : vector<64x128xf32>
    %21 = arith.addf %20, %15 : vector<64x128xf32>
    %22 = arith.truncf %21 : vector<64x128xf32> to vector<64x128xbf16>
    %c0_13 = arith.constant 0 : index
    %c0_14 = arith.constant 0 : index
    %23 = vector.load %arg7[%c0_13, %c0_14] : memref<128x128xbf16, #tpu.memory_space<vmem>>, vector<128x128xbf16>
    %cst_15 = arith.constant dense<0.000000e+00> : vector<64x128xf32>
    %24 = tpu.matmul %22, %23, %cst_15 {dimension_numbers = #tpu.dot_dimension_numbers<[1], [0], [0], [1], [0, 0, 1, 1], [], []>} : vector<64x128xbf16>, vector<128x128xbf16>, vector<64x128xf32> -> vector<64x128xf32>
    %c0_16 = arith.constant 0 : index
    %c0_17 = arith.constant 0 : index
    %25 = vector.load %arg8[%c0_16, %c0_17] : memref<1x128xf32, #tpu.memory_space<vmem>>, vector<1x128xf32>
    %26 = vector.broadcast %25 : vector<1x128xf32> to vector<64x128xf32>
    %27 = arith.addf %24, %26 : vector<64x128xf32>
    %28 = math.tanh %27 : vector<64x128xf32>
    %29 = arith.truncf %28 : vector<64x128xf32> to vector<64x128xbf16>
    %c0_18 = arith.constant 0 : index
    %c0_19 = arith.constant 0 : index
    %30 = vector.load %arg9[%c0_18, %c0_19] : memref<128x256xbf16, #tpu.memory_space<vmem>>, vector<128x256xbf16>
    %cst_20 = arith.constant dense<0.000000e+00> : vector<64x256xf32>
    %31 = tpu.matmul %29, %30, %cst_20 {dimension_numbers = #tpu.dot_dimension_numbers<[1], [0], [0], [1], [0, 0, 1, 1], [], []>} : vector<64x128xbf16>, vector<128x256xbf16>, vector<64x256xf32> -> vector<64x256xf32>
    %c0_21 = arith.constant 0 : index
    %c0_22 = arith.constant 0 : index
    %32 = vector.load %arg10[%c0_21, %c0_22] : memref<1x256xf32, #tpu.memory_space<vmem>>, vector<1x256xf32>
    %33 = vector.broadcast %32 : vector<1x256xf32> to vector<64x256xf32>
    %34 = arith.addf %31, %33 : vector<64x256xf32>
    %35 = arith.mulf %19, %19 : vector<64x128xf32>
    %36 = arith.mulf %15, %15 : vector<64x128xf32>
    %37 = arith.addf %35, %36 : vector<64x128xf32>
    %cst_23 = arith.constant 1.000000e+00 : f32
    %38 = vector.broadcast %cst_23 : f32 to vector<64x128xf32>
    %39 = arith.subf %37, %38 : vector<64x128xf32>
    %40 = arith.subf %39, %16 : vector<64x128xf32>
    %cst_24 = arith.constant 5.000000e-01 : f32
    %41 = vector.broadcast %cst_24 : f32 to vector<64x128xf32>
    %42 = arith.mulf %41, %40 : vector<64x128xf32>
    %cst_25 = arith.constant 0.000000e+00 : f32
    %43 = vector.broadcast %cst_25 : f32 to vector<64x256xf32>
    %44 = arith.maximumf %34, %43 : vector<64x256xf32>
    %45 = math.absf %34 : vector<64x256xf32>
    %cst_26 = arith.constant 0.000000e+00 : f32
    %46 = vector.broadcast %cst_26 : f32 to vector<64x256xf32>
    %47 = arith.subf %46, %45 : vector<64x256xf32>
    %48 = math.exp %47 : vector<64x256xf32>
    %cst_27 = arith.constant 1.000000e+00 : f32
    %49 = vector.broadcast %cst_27 : f32 to vector<64x256xf32>
    %50 = arith.addf %49, %48 : vector<64x256xf32>
    %51 = math.log %50 : vector<64x256xf32>
    %52 = arith.addf %44, %51 : vector<64x256xf32>
    %53 = arith.mulf %0, %34 : vector<64x256xf32>
    %54 = arith.subf %53, %52 : vector<64x256xf32>
    %55 = vector.shape_cast %42 : vector<64x128xf32> to vector<1x64x128xf32>
    %cst_28 = arith.constant dense<0.000000e+00> : vector<1xf32>
    %56 = vector.multi_reduction <add>, %55, %cst_28 [1, 2] : vector<1x64x128xf32> to vector<1xf32>
    %57 = vector.shape_cast %56 : vector<1xf32> to vector<1x1x1xf32>
    %58 = vector.extract %57[0, 0, 0] : f32 from vector<1x1x1xf32>
    %59 = vector.shape_cast %54 : vector<64x256xf32> to vector<1x64x256xf32>
    %cst_29 = arith.constant dense<0.000000e+00> : vector<1xf32>
    %60 = vector.multi_reduction <add>, %59, %cst_29 [1, 2] : vector<1x64x256xf32> to vector<1xf32>
    %61 = vector.shape_cast %60 : vector<1xf32> to vector<1x1x1xf32>
    %62 = vector.extract %61[0, 0, 0] : f32 from vector<1x1x1xf32>
    %63 = arith.subf %58, %62 : f32
    %64 = vector.broadcast %63 : f32 to vector<1x8x128xf32>
    %c0_30 = arith.constant 0 : index
    %c0_31 = arith.constant 0 : index
    %c0_32 = arith.constant 0 : index
    %65 = vector.load %arg11[%c0_30, %c0_31, %c0_32] : memref<1x8x128xf32, #tpu.memory_space<vmem>>, vector<1x8x128xf32>
    tpu.vector_store %arg11[%c0_30, %c0_31, %c0_32], %64 {strides = array<i32>} : memref<1x8x128xf32, #tpu.memory_space<vmem>>, vector<1x8x128xf32>,
    return
  }
  func.func @transform_0(%arg0: i32) -> (i32, i32) {
    %c0_i32 = arith.constant 0 : i32
    %c0_i32_0 = arith.constant 0 : i32
    return %arg0, %c0_i32 : i32, i32
  }
  func.func @transform_1(%arg0: i32) -> (i32, i32) {
    %c0_i32 = arith.constant 0 : i32
    %c0_i32_0 = arith.constant 0 : i32
    return %arg0, %c0_i32 : i32, i32
  }
  func.func @transform_2(%arg0: i32) -> (i32, i32) {
    %c0_i32 = arith.constant 0 : i32
    %c0_i32_0 = arith.constant 0 : i32
    %c0_i32_1 = arith.constant 0 : i32
    return %c0_i32, %c0_i32_0 : i32, i32
  }
  func.func @transform_3(%arg0: i32) -> (i32, i32) {
    %c0_i32 = arith.constant 0 : i32
    %c0_i32_0 = arith.constant 0 : i32
    %c0_i32_1 = arith.constant 0 : i32
    return %c0_i32, %c0_i32_0 : i32, i32
  }
  func.func @transform_4(%arg0: i32) -> (i32, i32) {
    %c0_i32 = arith.constant 0 : i32
    %c0_i32_0 = arith.constant 0 : i32
    %c0_i32_1 = arith.constant 0 : i32
    return %c0_i32, %c0_i32_0 : i32, i32
  }
  func.func @transform_5(%arg0: i32) -> (i32, i32) {
    %c0_i32 = arith.constant 0 : i32
    %c0_i32_0 = arith.constant 0 : i32
    %c0_i32_1 = arith.constant 0 : i32
    return %c0_i32, %c0_i32_0 : i32, i32
  }
  func.func @transform_6(%arg0: i32) -> (i32, i32) {
    %c0_i32 = arith.constant 0 : i32
    %c0_i32_0 = arith.constant 0 : i32
    %c0_i32_1 = arith.constant 0 : i32
    return %c0_i32, %c0_i32_0 : i32, i32
  }
  func.func @transform_7(%arg0: i32) -> (i32, i32) {
    %c0_i32 = arith.constant 0 : i32
    %c0_i32_0 = arith.constant 0 : i32
    %c0_i32_1 = arith.constant 0 : i32
    return %c0_i32, %c0_i32_0 : i32, i32
  }
  func.func @transform_8(%arg0: i32) -> (i32, i32) {
    %c0_i32 = arith.constant 0 : i32
    %c0_i32_0 = arith.constant 0 : i32
    %c0_i32_1 = arith.constant 0 : i32
    return %c0_i32, %c0_i32_0 : i32, i32
  }
  func.func @transform_9(%arg0: i32) -> (i32, i32) {
    %c0_i32 = arith.constant 0 : i32
    %c0_i32_0 = arith.constant 0 : i32
    %c0_i32_1 = arith.constant 0 : i32
    return %c0_i32, %c0_i32_0 : i32, i32
  }
  func.func @transform_10(%arg0: i32) -> (i32, i32, i32) {
    %c0_i32 = arith.constant 0 : i32
    %c0_i32_0 = arith.constant 0 : i32
    %c0_i32_1 = arith.constant 0 : i32
    return %arg0, %c0_i32, %c0_i32_0 : i32, i32, i32
  }
}

</mosaic_0001>

<bundles_post_ra>
// kernel: vae_forward.1
= control target key start
LH: loop header
LB: loop body
LE: loop exit
PB: predicated region body
PF: predicated region fallthrough
CT: control target
= control target key end

     0   :  { %s2872_s0 = inlined_call_operand.hbm [shape: f32[128,256], index: 0, kind: input, shape index: {}]   ;;  %s2873_s1 = inlined_call_operand.hbm [shape: f32[128,128], index: 1, kind: input, shape index: {}]   ;;  %s2874_s2 = inlined_call_operand.hbm [shape: bf16[256,128], index: 2, kind: input, shape index: {}]   ;;  %s2875_s3 = inlined_call_operand.vmem [shape: f32[1,128], index: 3, kind: input, shape index: {}]   ;;  %s2876_s4 = inlined_call_operand.hbm [shape: bf16[128,256], index: 4, kind: input, shape index: {}]   ;;  %s2877_s5 = inlined_call_operand.vmem [shape: f32[1,256], index: 5, kind: input, shape index: {}]   ;;  %s2878_s6 = inlined_call_operand.hbm [shape: bf16[128,128], index: 6, kind: input, shape index: {}]   ;;  %s2879_s7 = inlined_call_operand.vmem [shape: f32[1,128], index: 7, kind: input, shape index: {}]   ;;  %s2880_s8 = inlined_call_operand.hbm [shape: bf16[128,256], index: 8, kind: input, shape index: {}]   ;;  %s2881_s9 = inlined_call_operand.vmem [shape: f32[1,256], index: 9, kind: input, shape index: {}]   ;;  %s2882_s10 = inlined_call_operand.vmem [shape: f32[2,8,128], index: 10, kind: output, shape index: {}]  }
   0x1   :  { %2887 = sst [smem:[#allocation17_spill]] %s2872_s0 }
   0x2   :  { %2888 = sst [smem:[#allocation18_spill]] %s2874_s2 }
   0x3   :  { %2889 = sst [smem:[#allocation19_spill]] %s2876_s4 }
   0x4   :  { %2890 = sst [smem:[#allocation20_spill]] %s2878_s6 }
   0x5   :  { %2891 = sst [smem:[#allocation21_spill]] %s2880_s8 }
   0x6   :  { %15 = vsyncpa [#allocation3], 0 }
   0x7   :  { %17 = vsyncpa [#allocation3 + $0x1], 0 }
   0x8   :  { %18 = vsyncpa [#allocation5], 0 }
   0x9   :  { %20 = vsyncpa [#allocation5 + $0x1], 0 }
   0xa   :  { %21 = vsyncpa [#allocation8], 0 }
   0xb   :  { %22 = vsyncpa [#allocation11], 0  ;;  %s2416_s13 = smov 0   ;;  %s2418_s14 = smov 0  }
   0xc   :  { %s2420_s15 = smov 0   ;;  %s2422_s16 = smov 0  }
   0xd LB: > { %s2435_s17 = sadd.s32 4294967295, %s2346_s16   ;;  %p48_p0 = scmp.ne.s32.totalorder %s2338_s14, %s2334_s13  ;;  %s2346_s16 = sphi %s2422_s16, %s2914_s16   ;;  %s2342_s15 = sphi %s2420_s15, %s2913_s15   ;;  %s2338_s14 = sphi %s2418_s14, %s2912_s14   ;;  %s2334_s13 = sphi %s2416_s13, %s2911_s13  }
   0xe   : > { %p2885_p1 = scmp.eq.s32.totalorder %s2435_s17, 0  ;;  %p1672_p2 = scmp.ge.s32.totalorder %s2346_s16, 1 }
   0xf   : > { %p279_p3 = scmp.lt.s32.totalorder %s2346_s16, 3  ;;  %s2348_s20 = smov [#allocation6]  }
  0x10   : > { %p2443_p4 = por %p2885_p1, %p48_p0  ;;  %s291_s21 = sshll.u32 %s2348_s20, 4  ;;  %s292_s21 = int_to_ptr.vmem [resolvable:$true] %s291_s21 }
  0x11   : > { %p2447_p5 = pnand %p1672_p2, %p279_p3  ;;  %s2349_s23 = smov [#allocation7]  }
  0x12   : > { %s2892_s18 = scalar_select %p2443_p4, 1, 0 }
  0x13   : > { %p1864_p6 = pneg %p2447_p5  ;;  %s307_s24 = sshll.u32 %s2349_s23, 4  ;;  %s308_s24 = int_to_ptr.vmem [resolvable:$true] %s307_s24 }
  0x14   : > { %s2147_s25 = scalar_lea.vmem %s292_s21, 2048  ;;  %p2155_p12 = scmp.lt.s32.totalorder %s292_s21, %s292_s21 }
  0x15   : > { %p2455_p7 = pnand %p1864_p6, %p2885_p1  ;;  %p2148_p9 = scmp.ne.s32.totalorder %s292_s21, %s2147_s25 }
  0x16   : > { %p2156_p13 = scmp.lt.s32.totalorder %s2147_s25, %s2147_s25 }
  0x17   : > { %p2138_p8 = pneg %p2455_p7 }
  0x18   : > { %p2157_p0 = por %p2156_p13, %p2155_p12 }
  0x19   : > { %p2150_p10 = pnand %p2148_p9, %p2138_p8 }
  0x1b   : > { %p2151_p11 = pneg %p2150_p10 }
  0x1d   : > { %p2158_p2 = pnand %p2157_p0, %p2151_p11 }
  0x1f   : > { %2161 = shalt.err (!%p2158_p2)
}
  0x20   : > { %s2350_s26 = smov 64   ;;  %s2351_s27 = smov 4  }
  0x21   : > { %s2895_s2 = sld [smem:[#allocation18_spill]]  ;;  %s2173_s30 = scalar_lea.vmem %s308_s24, 2048 }
  0x22   : > { %p2174_p3 = scmp.ne.s32.totalorder %s308_s24, %s2173_s30  ;;  %p2181_p10 = scmp.lt.s32.totalorder %s308_s24, %s308_s24 }
  0x23   : > { %p2182_p11 = scmp.lt.s32.totalorder %s2173_s30, %s2173_s30 }
  0x24   : > { %p2176_p6 = pnand %p2174_p3, %p2138_p8 }
  0x25   : > { %p2183_p12 = por %p2182_p11, %p2181_p10 }
  0x26   : > { %p2177_p9 = pneg %p2176_p6 }
  0x27   : > { %1867 = dma.hbm_to_vmem [thread:$0]  (!%p2455_p7), %s2895_s2, 2048, %s292_s21, [#allocation5], %s2350_s26, %s2350_s26, %s2351_s27  }
  0x28   : > { %p2184_p13 = pnand %p2183_p12, %p2177_p9 }
  0x2a   : > { %2187 = shalt.err (!%p2184_p13)
}
  0x2b   : > { %s2883_s11 = smov 128   ;;  %s2884_s12 = smov 8  }
  0x2c   : > { %s2896_s4 = sld [smem:[#allocation19_spill]]  ;;  %s2354_s21 = smov [#allocation9]  }
  0x2d   : > { %s323_s23 = sshll.u32 %s2354_s21, 4  ;;  %s2355_s25 = smov [#allocation10]   ;;  %s324_s23 = int_to_ptr.vmem [resolvable:$true] %s323_s23 }
  0x2e   : > { %s339_s28 = sshll.u32 %s2355_s25, 4  ;;  %s2199_s29 = scalar_lea.vmem %s324_s23, 1024  ;;  %s340_s28 = int_to_ptr.vmem [resolvable:$true] %s339_s28 }
  0x2f   : > { %p2200_p0 = scmp.ne.s32.totalorder %s324_s23, %s2199_s29  ;;  %p2207_p6 = scmp.lt.s32.totalorder %s324_s23, %s324_s23 }
  0x30   : > { %p2208_p9 = scmp.lt.s32.totalorder %s2199_s29, %s2199_s29 }
  0x31   : > { %p2202_p2 = pnand %p2200_p0, %p2138_p8 }
  0x32   : > { %1870 = dma.hbm_to_vmem [thread:$0]  (!%p2455_p7), %s2896_s4, 2048, %s308_s24, [#allocation8], %s2883_s11, %s2883_s11, %s2884_s12  }
  0x33   : > { %p2203_p3 = pneg %p2202_p2  ;;  %p2209_p10 = por %p2208_p9, %p2207_p6 }
  0x35   : > { %p2210_p11 = pnand %p2209_p10, %p2203_p3 }
  0x37   : > { %2213 = shalt.err (!%p2210_p11)
}
  0x38   : > { %s2897_s6 = sld [smem:[#allocation20_spill]]  ;;  %s2225_s13 = scalar_lea.vmem %s340_s28, 2048 }
  0x39   : > { %p2226_p12 = scmp.ne.s32.totalorder %s340_s28, %s2225_s13  ;;  %p2233_p2 = scmp.lt.s32.totalorder %s340_s28, %s340_s28 }
  0x3a   : > { %p2234_p6 = scmp.lt.s32.totalorder %s2225_s13, %s2225_s13 }
  0x3b   : > { %p2228_p13 = pnand %p2226_p12, %p2138_p8 }
  0x3c   : > { %p2235_p3 = por %p2234_p6, %p2233_p2 }
  0x3d   : > { %p2229_p0 = pneg %p2228_p13 }
  0x3e   : > { %1873 = dma.hbm_to_vmem [thread:$0]  (!%p2455_p7), %s2897_s6, 1024, %s324_s23, [#allocation8], %s2350_s26, %s2350_s26, %s2351_s27  }
  0x3f   : > { %p2236_p9 = pnand %p2235_p3, %p2229_p0 }
  0x41   : > { %2239 = shalt.err (!%p2236_p9)
}
  0x42   : > { %s2898_s8 = sld [smem:[#allocation21_spill]]  ;;  %s2506_s26 = sadd.s32 1, %s2346_s16  }
  0x43   : > { %s32_s22 = ssub.s32 %s2346_s16, %s2506_s26  ;;  %s35_s27 = sadd.s32 1, %s2342_s15 }
  0x44   : > { %p33_p8 = scmp.eq.s32.totalorder %s32_s22, 0  ;;  %p42_p10 = scmp.ne.s32.totalorder %s2342_s15, %s2338_s14 }
  0x45   : > { %p43_p11 = scmp.eq.s32.totalorder %s2346_s16, 0  ;;  %p1888_p13 = scmp.lt.s32.totalorder %s2346_s16, 2 }
  0x46   : > { %s2515_s23 = scalar_select %p33_p8, %s2342_s15, %s35_s27  }
  0x47   : > { %p44_p12 = por %p43_p11, %p42_p10  ;;  %s2519_s25 = sand.u32 1, %s2342_s15  }
  0x48   : > { %1876 = dma.hbm_to_vmem [thread:$0]  (!%p2455_p7), %s2898_s8, 2048, %s340_s28, [#allocation11], %s2883_s11, %s2883_s11, %s2884_s12  }
  0x49   : > { %s1762_s29 = sshll.u32 %s2346_s16, 11  ;;  %s1678_s24 = sshll.u32 %s2519_s25, 7 }
  0x4a   : > { %s2899_s0 = sld [smem:[#allocation17_spill]]  ;;  %s360_s20 = scalar_lea.vmem [#allocation2], %s1678_s24 }
  0x4b   : > { %s368_s21 = sshll.u32 %s360_s20, 4  ;;  %p2528_p7 = pnand %p1888_p13, %p44_p12  ;;  %s2532_s21 = int_to_ptr.vmem [resolvable:$true] %s368_s21 }
  0x4d   : > { %p2242_p2 = pneg %p2528_p7 }
  0x50   : > { %s2526_s13 = scalar_lea.hbm %s2899_s0, %s1762_s29  ;;  %s2245_s30 = scalar_lea.hbm %s2899_s0, 4096 }
  0x51   : > { %s2240_s11 = scalar_lea.hbm %s2526_s13, 2048  ;;  %p2246_p9 = scmp.lt.s32.totalorder %s2526_s13, %s2899_s0 }
  0x52   : > { %p2241_p0 = scmp.ne.s32.totalorder %s2526_s13, %s2240_s11  ;;  %p2247_p8 = scmp.lt.s32.totalorder %s2245_s30, %s2240_s11 }
  0x54   : > { %p2243_p6 = pnand %p2242_p2, %p2241_p0  ;;  %p2248_p10 = por %p2247_p8, %p2246_p9 }
  0x56   : > { %p2244_p3 = pneg %p2243_p6 }
  0x58   : > { %p2249_p11 = pnand %p2248_p10, %p2244_p3 }
  0x5a   : > { %2252 = shalt.err (!%p2249_p11)
}
  0x5b   : > { %s2253_s12 = scalar_lea.vmem %s2532_s21, 2048  ;;  %s2356_s29 = smov [#allocation2]  }
  0x5c   : > { %p2254_p12 = scmp.ne.s32.totalorder %s2532_s21, %s2253_s12  ;;  %s2258_s24 = sshll.u32 %s2356_s29, 4  ;;  %s2259_s24 = int_to_ptr.vmem [resolvable:$false] %s2258_s24 }
  0x5d   : > { %s2260_s27 = scalar_lea.vmem %s2259_s24, 4096  ;;  %p2261_p6 = scmp.lt.s32.totalorder %s2532_s21, %s2259_s24 }
  0x5e   : > { %p2256_p13 = pnand %p2254_p12, %p2242_p2  ;;  %p2262_p1 = scmp.lt.s32.totalorder %s2260_s27, %s2253_s12 }
  0x60   : > { %p2257_p0 = pneg %p2256_p13  ;;  %p2263_p4 = por %p2262_p1, %p2261_p6 }
  0x62   : > { %p2264_p9 = pnand %p2263_p4, %p2257_p0 }
  0x64   : > { %2267 = shalt.err (!%p2264_p9)
}
  0x65   : > { %s2357_s11 = smov 256   ;;  %s2358_s30 = smov 16  }
  0x66   : > { %s2901_s28 = scalar_lea.sflag [#allocation3], %s2519_s25  ;;  %s378_s20 = sand.u32 1, %s2346_s16  }
  0x67   : > { %1880 = dma.hbm_to_vmem [thread:$0]  (!%p2528_p7), %s2526_s13, 2048, %s2532_s21, %s2901_s28, %s2357_s11, %s2357_s11, %s2358_s30  }
  0x68   : > { %s1682_s29 = sshll.u32 %s2519_s25, 6  ;;  %s1763_s24 = sshll.u32 %s2346_s16, 10 }
  0x69   : > { %s382_s12 = scalar_lea.vmem [#allocation4], %s1682_s29  ;;  %s2567_s4 = scalar_lea.hbm %s2873_s1, %s1763_s24 }
  0x6a   : > { %s389_s27 = sshll.u32 %s382_s12, 4  ;;  %s379_s6 = scalar_lea.sflag [#allocation5], %s378_s20  ;;  %s2569_s27 = int_to_ptr.vmem [resolvable:$true] %s389_s27 }
  0x6b   : > { %s2268_s8 = scalar_lea.hbm %s2567_s4, 1024  ;;  %s2273_s13 = scalar_lea.hbm %s2873_s1, 2048 }
  0x6c   : > { %p2269_p1 = scmp.ne.s32.totalorder %s2567_s4, %s2268_s8  ;;  %p2274_p8 = scmp.lt.s32.totalorder %s2567_s4, %s2873_s1 }
  0x6d   : > { %p2275_p10 = scmp.lt.s32.totalorder %s2273_s13, %s2268_s8 }
  0x6e   : > { %p2271_p4 = pnand %p2269_p1, %p2242_p2 }
  0x6f   : > { %p2276_p11 = por %p2275_p10, %p2274_p8 }
  0x70   : > { %p2272_p3 = pneg %p2271_p4 }
  0x72   : > { %p2277_p12 = pnand %p2276_p11, %p2272_p3 }
  0x74   : > { %2280 = shalt.err (!%p2277_p12)
}
  0x75   : > { %s2281_s2 = scalar_lea.vmem %s2569_s27, 1024  ;;  %s2359_s11 = smov [#allocation4]  }
  0x76   : > { %p2282_p13 = scmp.ne.s32.totalorder %s2569_s27, %s2281_s2  ;;  %s2286_s30 = sshll.u32 %s2359_s11, 4  ;;  %s2287_s30 = int_to_ptr.vmem [resolvable:$false] %s2286_s30 }
  0x77   : > { %s2288_s28 = scalar_lea.vmem %s2287_s30, 2048  ;;  %p2289_p9 = scmp.lt.s32.totalorder %s2569_s27, %s2287_s30 }
  0x78   : > { %p2284_p0 = pnand %p2282_p13, %p2242_p2  ;;  %p2290_p1 = scmp.lt.s32.totalorder %s2288_s28, %s2281_s2 }
  0x7a   : > { %p2285_p6 = pneg %p2284_p0  ;;  %p2291_p4 = por %p2290_p1, %p2289_p9 }
  0x7c   : > { %p2292_p8 = pnand %p2291_p4, %p2285_p6 }
  0x7e   : > { %2295 = shalt.err (!%p2292_p8)
}
  0x7f   : > { %s2902_s8 = smov 8   ;;  %s2903_s20 = smov 128  }
  0x80   : > { %1883 = dma.hbm_to_vmem [thread:$0]  (!%p2528_p7), %s2567_s4, 1024, %s2569_s27, %s379_s6, %s2903_s20, %s2903_s20, %s2902_s8  }
  0x81   : > { %401 = sbr.rel (%p2447_p5) target bundleno = 1327 (0x52f), region = 60  ;;  %s403_s29 = sand.u32 (!%p2447_p5), 1, %s2338_s14  }
  0x82   : > { %s1686_s24 = sshll.u32 (!%p2447_p5), %s403_s29, 7  ;;  %s404_s12 = scalar_lea.sflag (!%p2447_p5), [#allocation3], %s403_s29 }
  0x83   : > { %s2599_s16 = scalar_lea.vmem (!%p2447_p5), [#allocation2], %s1686_s24  ;;  %p2904_p2 = scmp.ne.s32.totalorder (!%p2447_p5), %s2892_s18, 0 }
  0x86   : > { %2313 = dma.done.wait (%p2904_p2), %s404_s12, 2048  }
  0x87   : > { %2315 = vsyncadd (%p2904_p2), %s404_s12, 4294965248  ;;  %s412_s22 = sand.u32 1, %s2435_s17   ;;  %s1687_s25 = sshll.u32 %s403_s29, 6 }
  0x88   : > { %s413_s4 = scalar_lea.sflag [#allocation5], %s412_s22  ;;  %s2606_s6 = scalar_lea.vmem [#allocation4], %s1687_s25 }
  0x89   : > { %2317 = dma.done.wait (%p2904_p2), %s413_s4, 1024  }
  0x8a   : > { %2319 = vsyncadd (%p2904_p2), %s413_s4, 4294966272  ;;  %p2905_p5 = scmp.eq.s32.totalorder %s2435_s17, 0 }
  0x8c   : > { %2321 = dma.done.wait (%p2905_p5), [#allocation5], 2048   ;;  %p2906_p7 = pmov %p2905_p5 }
  0x8d   : > { %p2907_p3 = pmov %p2905_p5 }
  0x8e   : > { %2323 = vsyncadd (%p2906_p7), [#allocation5], 4294965248 }
  0x8f   : > { %2325 = dma.done.wait (%p2907_p3), [#allocation8], 3072   ;;  %p2908_p10 = pmov %p2907_p3 }
  0x90   : > { %p2909_p11 = pmov %p2907_p3 }
  0x91   : > { %2327 = vsyncadd (%p2908_p10), [#allocation8], 4294964224 }
  0x92   : > { %2329 = dma.done.wait (%p2909_p11), [#allocation11], 2048   ;;  %p2910_p12 = pmov %p2907_p3 }
  0x93   : > { %v1936_v0 = vld [vmem:[#allocation6 + $0x78] sm:$0xff]   ;;  %v1938_v2 = vld [vmem:[#allocation6 + $0x70] sm:$0xff]   ;;  %v1940_v4 = vld [vmem:[#allocation6 + $0x68] sm:$0xff]   ;;  %v2360_v56 = vmov 0   ;;  %p475_p13 = scmp.lt.s32.totalorder %s2435_s17, 1 }
  0x94   : > { %2331 = vsyncadd (%p2910_p12), [#allocation11], 4294965248  ;;  %v1937_v1 = vld [vmem:[#allocation6 + $0x38] sm:$0xff]   ;;  %1764 = vmatprep.subr.bf16.mxu0 %v1936_v0  ;;  %v1939_v3 = vld [vmem:[#allocation6 + $0x30] sm:$0xff]   ;;  %864 = vmatprep.mubr.bf16.mxu1 %v2360_v56 }
  0x95   : > { %1765 = vmatpush3.bf16.msra.mxu0 %v1937_v1  ;;  %v1941_v5 = vld [vmem:[#allocation6 + $0x28] sm:$0xff]   ;;  %v1942_v6 = vld [vmem:[#allocation6 + $0x60] sm:$0xff]   ;;  %v1944_v8 = vld [vmem:[#allocation6 + $0x58] sm:$0xff]   ;;  %s2916_s17 = smov (!%p475_p13, %s2435_s17), 1 }
  0x96   : > { %1766 = vmatprep.subr.bf16.mxu0 %v1938_v2  ;;  %v1943_v7 = vld [vmem:[#allocation6 + $0x20] sm:$0xff]   ;;  %v1945_v9 = vld [vmem:[#allocation6 + $0x18] sm:$0xff]   ;;  %v1946_v10 = vld [vmem:[#allocation6 + $0x50] sm:$0xff]   ;;  %s1692_s30 = sshll.u32 %s2916_s17, 3 }
  0x97   : > { %v481_v11 = vld [vmem:[%s2599_s16 + $0x8] sm:$0xff]  ;;  %v483_v12 = vld [vmem:[%s2599_s16 + $0x18] sm:$0xff]  ;;  %v1947_v14 = vld [vmem:[#allocation6 + $0x10] sm:$0xff]   ;;  %s478_s24 = scalar_lea.vmem %s2882_s10, %s1692_s30 }
  0x98   : > { %v505_v13 = vpack.c.bf16 %v483_v12, %v481_v11  ;;  %v1948_v15 = vld [vmem:[#allocation6 + $0x48] sm:$0xff]   ;;  %v1950_v17 = vld [vmem:[#allocation6 + $0x40] sm:$0xff]   ;;  %v1952_v18 = vld [vmem:[#allocation7 + $0x74] ss:$8 sps:$4 sm:$0xff]  }
  0x99   : > { %1767 = vmatpush3.bf16.msra.mxu0 %v1939_v3  ;;  %v1949_v16 = vld [vmem:[#allocation6 + $0x8] sm:$0xff]   ;;  %v1954_v19 = vld [vmem:[#allocation7 + $0x70] ss:$8 sps:$4 sm:$0xff]   ;;  %832 = vmatprep.subr.bf16.mxu1 %v1952_v18  ;;  %v1951_v21 = vld [vmem:[#allocation6] sm:$0xff]  }
  0x9a   : > { %1768 = vmatprep.subr.bf16.mxu0 %v1940_v4  ;;  %679 = vmatprep.mubr.bf16.mxu0 %v505_v13  ;;  %v1955_v20 = vld [vmem:[#allocation7 + $0x64] ss:$8 sps:$4 sm:$0xff]   ;;  %v482_v23 = vld [vmem:[%s2599_s16 + $0x10] sm:$0xff]  ;;  %v487_v25 = vld [vmem:[%s2599_s16 + $0x38] sm:$0xff] }
  0x9b   : > { %v480_v22 = vld [vmem:[%s2599_s16] sm:$0xff]  ;;  %833 = vmatpush1.bf16.msra.mxu1 %v1954_v19  ;;  %v485_v24 = vld [vmem:[%s2599_s16 + $0x28] sm:$0xff]  ;;  %v486_v29 = vld [vmem:[%s2599_s16 + $0x30] sm:$0xff] }
  0x9c   : > { %834 = vmatprep.subr.bf16.mxu1 %v1955_v20  ;;  %v504_v26 = vpack.c.bf16 %v482_v23, %v480_v22  ;;  %v507_v27 = vpack.c.bf16 %v487_v25, %v485_v24  ;;  %v484_v28 = vld [vmem:[%s2599_s16 + $0x20] sm:$0xff]  ;;  %v489_v30 = vld [vmem:[%s2599_s16 + $0x48] sm:$0xff]  ;;  %v491_v31 = vld [vmem:[%s2599_s16 + $0x58] sm:$0xff] }
  0x9d   : > { %1769 = vmatpush3.bf16.msra.mxu0 %v1941_v5  ;;  %v506_v32 = vpack.c.bf16 %v486_v29, %v484_v28  ;;  %v509_v33 = vpack.c.bf16 %v491_v31, %v489_v30  ;;  %v488_v34 = vld [vmem:[%s2599_s16 + $0x40] sm:$0xff]  ;;  %v490_v35 = vld [vmem:[%s2599_s16 + $0x50] sm:$0xff]  ;;  %v493_v36 = vld [vmem:[%s2599_s16 + $0x68] sm:$0xff] }
  0x9e   : > { %1770 = vmatprep.subr.bf16.mxu0 %v1942_v6  ;;  %v495_v37 = vld [vmem:[%s2599_s16 + $0x78] sm:$0xff]  ;;  %v508_v38 = vpack.c.bf16 %v490_v35, %v488_v34  ;;  %v492_v40 = vld [vmem:[%s2599_s16 + $0x60] sm:$0xff]  ;;  %v494_v41 = vld [vmem:[%s2599_s16 + $0x70] sm:$0xff] }
  0x9f   : > { %v511_v39 = vpack.c.bf16 %v495_v37, %v493_v36  ;;  %v510_v42 = vpack.c.bf16 %v494_v41, %v492_v40  ;;  %v1957_v43 = vld [vmem:[#allocation7 + $0x60] ss:$8 sps:$4 sm:$0xff]   ;;  %v1958_v44 = vld [vmem:[#allocation7 + $0x54] ss:$8 sps:$4 sm:$0xff]   ;;  %v1960_v45 = vld [vmem:[#allocation7 + $0x50] ss:$8 sps:$4 sm:$0xff]  }
  0xa0   : > { %835 = vmatpush1.bf16.msra.mxu1 %v1957_v43  ;;  %v1961_v46 = vld [vmem:[#allocation7 + $0x44] ss:$8 sps:$4 sm:$0xff]   ;;  %v1963_v47 = vld [vmem:[#allocation7 + $0x40] ss:$8 sps:$4 sm:$0xff]   ;;  %v1964_v48 = vld [vmem:[#allocation7 + $0x34] ss:$8 sps:$4 sm:$0xff]  }
  0xa1   : > { %1771 = vmatpush3.bf16.msra.mxu0 %v1943_v7  ;;  %836 = vmatprep.subr.bf16.mxu1 %v1958_v44  ;;  %v1966_v49 = vld [vmem:[#allocation7 + $0x30] ss:$8 sps:$4 sm:$0xff]   ;;  %v1967_v50 = vld [vmem:[#allocation7 + $0x24] ss:$8 sps:$4 sm:$0xff]   ;;  %v1969_v51 = vld [vmem:[#allocation7 + $0x20] ss:$8 sps:$4 sm:$0xff]  }
  0xa2   : > { %1772 = vmatprep.subr.bf16.mxu0 %v1944_v8  ;;  %v1970_v52 = vld [vmem:[#allocation7 + $0x14] ss:$8 sps:$4 sm:$0xff]   ;;  %v1972_v53 = vld [vmem:[#allocation7 + $0x10] ss:$8 sps:$4 sm:$0xff]   ;;  %v1973_v54 = vld [vmem:[#allocation7 + $0x4] ss:$8 sps:$4 sm:$0xff]  }
  0xa3   : > { %v1975_v55 = vld [vmem:[#allocation7] ss:$8 sps:$4 sm:$0xff]   ;;  %v1981_v43 = vld [vmem:[#allocation9 + $0x10] sm:$0xff]  }
  0xa4   : > { %837 = vmatpush1.bf16.msra.mxu1 %v1960_v45  ;;  %v1693_v59 = vld [vmem:[%s2875_s3] ss:$0 sm:$0xff]  ;;  %v1978_v40 = vld [vmem:[#allocation9 + $0x28] sm:$0xff]  }
  0xa5   : > { %1773 = vmatpush3.bf16.msra.mxu0 %v1945_v9  ;;  %838 = vmatprep.subr.bf16.mxu1 %v1961_v46  ;;  %v1979_v41 = vld [vmem:[#allocation9 + $0x20] sm:$0xff]   ;;  %v1982_v44 = vld [vmem:[#allocation9 + $0x8] sm:$0xff]   ;;  %v742_v46 = vlaneseq }
  0xa6   : > { %1774 = vmatprep.subr.bf16.mxu0 %v1946_v10  ;;  %v1983_v45 = vld [vmem:[#allocation9] sm:$0xff]  }
  0xa8   : > { %839 = vmatpush1.bf16.msra.mxu1 %v1963_v47  ;;  %v2648_v47 = vshrl.u32 %v742_v46, 7 }
  0xa9   : > { %1775 = vmatpush3.bf16.msra.mxu0 %v1947_v14  ;;  %840 = vmatprep.subr.bf16.mxu1 %v1964_v48 }
  0xaa   : > { %1776 = vmatprep.subr.bf16.mxu0 %v1948_v15  ;;  %v748_v48 = vsub.s32 1, %v2648_v47 }
  0xac   : > { %841 = vmatpush1.bf16.msra.mxu1 %v1966_v49  ;;  %v740_v49 = vld [vmem:[%s2877_s5] sm:$0x3] }
  0xad   : > { %1777 = vmatpush3.bf16.msra.mxu0 %v1949_v16  ;;  %842 = vmatprep.subr.bf16.mxu1 %v1967_v50  ;;  %v2656_v50 = vrot.slane %v740_v49, %v748_v48 }
  0xae   : > { %1778 = vmatprep.subr.bf16.mxu0 %v1950_v17 }
  0xb0   : > { %843 = vmatpush1.bf16.msra.mxu1 %v1969_v51 }
  0xb1   : > { %1779 = vmatpush3.bf16.msra.mxu0 %v1951_v21  ;;  %844 = vmatprep.subr.bf16.mxu1 %v1970_v52 }
  0xb4   : > { %680 = vmatmul.mubr.bf16.vlgmr.msra.gmra.mxu0 %v504_v26  ;;  %845 = vmatpush1.bf16.msra.mxu1 %v1972_v53 }
  0xb5   : > { %687 = vmatprep.mubr.bf16.mxu0 %v507_v27  ;;  %846 = vmatprep.subr.bf16.mxu1 %v1973_v54 }
  0xb8   : > { %847 = vmatpush1.bf16.msra.mxu1 %v1975_v55 }
  0xbc   : > { %688 = vmatmul.mubr.bf16.gmra.mxu0 %v506_v32 }
  0xbd   : > { %695 = vmatprep.mubr.bf16.mxu0 %v509_v33 }
  0xc4   : > { %696 = vmatmul.mubr.bf16.gmra.mxu0 %v508_v38  ;;  %v1976_v38 = vld [vmem:[#allocation9 + $0x38] sm:$0xff]  }
  0xc5   : > { %703 = vmatprep.mubr.bf16.mxu0 %v511_v39  ;;  %1816 = vmatprep.subr.bf16.mxu0 %v1976_v38  ;;  %v1977_v39 = vld [vmem:[#allocation9 + $0x30] sm:$0xff]  }
  0xc6   : > { %1817 = vmatpush3.bf16.msra.mxu0 %v1976_v38 }
  0xc7   : > { %1818 = vmatprep.subr.bf16.mxu0 %v1977_v39 }
  0xca   : > { %1819 = vmatpush3.bf16.msra.mxu0 %v1977_v39 }
  0xcb   : > { %1820 = vmatprep.subr.bf16.mxu0 %v1978_v40 }
  0xcc   : > { %704 = vmatmul.mubr.bf16.gmra.mxu0 %v510_v42  ;;  %v1980_v42 = vld [vmem:[#allocation9 + $0x18] sm:$0xff]  }
  0xce   : > { %1821 = vmatpush3.bf16.msra.mxu0 %v1978_v40 }
  0xcf   : > { %1822 = vmatprep.subr.bf16.mxu0 %v1979_v41 }
  0xd2   : > { %1823 = vmatpush3.bf16.msra.mxu0 %v1979_v41  ;;  %v498_v41 = vld [vmem:[%s2606_s6 + $0x10] sm:$0xff] }
  0xd3   : > { %1824 = vmatprep.subr.bf16.mxu0 %v1980_v42 }
  0xd6   : > { %1825 = vmatpush3.bf16.msra.mxu0 %v1980_v42 }
  0xd7   : > { %1826 = vmatprep.subr.bf16.mxu0 %v1981_v43 }
  0xda   : > { %1827 = vmatpush3.bf16.msra.mxu0 %v1981_v43 }
  0xdb   : > { %1828 = vmatprep.subr.bf16.mxu0 %v1982_v44 }
  0xde   : > { %1829 = vmatpush3.bf16.msra.mxu0 %v1982_v44 }
  0xdf   : > { %1830 = vmatprep.subr.bf16.mxu0 %v1983_v45 }
  0xe2   : > { %1831 = vmatpush3.bf16.msra.mxu0 %v1983_v45 }
 0x174   : > { %v1780_v57 = vpop.f32.mrf.mxu0 }
 0x176   : > { %v1781_v58 = vpop.f32.mrf.mxu0 }
 0x177   : > { %v1782_v60 = vadd.f32 %v1781_v58, %v1780_v57 }
 0x178   : > { %v1783_v61 = vpop.f32.mrf.mxu0 }
 0x179   : > { %v682_v62 = vadd.f32 %v1782_v60, %v1693_v59 }
 0x17a   : > { %v1784_v63 = vpop.f32.mrf.mxu0 }
 0x17b   : > { %v1785_v0 = vadd.f32 %v1784_v63, %v1783_v61  ;;  %2008 = vtanh.f32 %v682_v62 }
 0x17c   : > { %v1786_v1 = vpop.f32.mrf.mxu0 }
 0x17d   : > { %v685_v2 = vadd.f32 %v1785_v0, %v1693_v59 }
 0x17e   : > { %v1787_v3 = vpop.f32.mrf.mxu0 }
 0x17f   : > { %2010 = vtanh.f32 %v685_v2  ;;  %v1788_v4 = vadd.f32 %v1787_v3, %v1786_v1 }
 0x180   : > { %v1789_v5 = vpop.f32.mrf.mxu0 }
 0x181   : > { %v690_v6 = vadd.f32 %v1788_v4, %v1693_v59 }
 0x182   : > { %v1790_v7 = vpop.f32.mrf.mxu0 }
 0x183   : > { %v1791_v8 = vadd.f32 %v1790_v7, %v1789_v5  ;;  %2012 = vtanh.f32 %v690_v6 }
 0x184   : > { %v1792_v9 = vpop.f32.mrf.mxu0 }
 0x185   : > { %v693_v10 = vadd.f32 %v1791_v8, %v1693_v59 }
 0x186   : > { %v1793_v11 = vpop.f32.mrf.mxu0 }
 0x187   : > { %2014 = vtanh.f32 %v693_v10  ;;  %v1794_v12 = vadd.f32 %v1793_v11, %v1792_v9  ;;  %v744_v9 = vsub.s32 0, %v2648_v47 }
 0x188   : > { %v1795_v13 = vpop.f32.mrf.mxu0  ;;  %v2009_v16 = vpop.eup %2008 }
 0x189   : > { %v698_v14 = vadd.f32 %v1794_v12, %v1693_v59 }
 0x18a   : > { %v1796_v15 = vpop.f32.mrf.mxu0 }
 0x18b   : > { %v1797_v17 = vadd.f32 %v1796_v15, %v1795_v13  ;;  %2016 = vtanh.f32 %v698_v14 }
 0x18c   : > { %v2011_v18 = vpop.eup %2010  ;;  %v1798_v19 = vpop.f32.mrf.mxu0 }
 0x18d   : > { %v701_v20 = vadd.f32 %v1797_v17, %v1693_v59  ;;  %v720_v21 = vpack.c.bf16 %v2011_v18, %v2009_v16  ;;  %v2681_v16 = vrot.slane %v740_v49, %v744_v9 }
 0x18e   : > { %v1799_v22 = vpop.f32.mrf.mxu0 }
 0x18f   : > { %2018 = vtanh.f32 %v701_v20  ;;  %v1800_v23 = vadd.f32 %v1799_v22, %v1798_v19  ;;  %865 = vmatmul.mubr.bf16.vlgmr.msra.gmra.mxu1 %v720_v21  ;;  %v496_v19 = vld [vmem:[%s2606_s6] sm:$0xff] }
 0x190   : > { %v1801_v24 = vpop.f32.mrf.mxu0  ;;  %874 = vmatprep.mubr.bf16.mxu1 %v2360_v56  ;;  %v2013_v27 = vpop.eup %2012 }
 0x191   : > { %v706_v25 = vadd.f32 %v1800_v23, %v1693_v59  ;;  %v497_v23 = vld [vmem:[%s2606_s6 + $0x8] sm:$0xff] }
 0x192   : > { %v1802_v26 = vpop.f32.mrf.mxu0 }
 0x193   : > { %v1803_v28 = vadd.f32 %v1802_v26, %v1801_v24  ;;  %2020 = vtanh.f32 %v706_v25 }
 0x194   : > { %v2015_v29 = vpop.eup %2014 }
 0x195   : > { %v709_v30 = vadd.f32 %v1803_v28, %v1693_v59  ;;  %v721_v31 = vpack.c.bf16 %v2015_v29, %v2013_v27 }
 0x197   : > { %2022 = vtanh.f32 %v709_v30  ;;  %875 = vmatmul.mubr.bf16.gmra.mxu1 %v721_v31 }
 0x198   : > { %884 = vmatprep.mubr.bf16.mxu1 %v2360_v56  ;;  %v2017_v32 = vpop.eup %2016 }
 0x19c   : > { %v2019_v33 = vpop.eup %2018 }
 0x19d   : > { %v722_v34 = vpack.c.bf16 %v2019_v33, %v2017_v32 }
 0x19f   : > { %885 = vmatmul.mubr.bf16.gmra.mxu1 %v722_v34 }
 0x1a0   : > { %894 = vmatprep.mubr.bf16.mxu1 %v2360_v56  ;;  %v2021_v35 = vpop.eup %2020 }
 0x1a4   : > { %v2023_v36 = vpop.eup %2022 }
 0x1a5   : > { %v723_v37 = vpack.c.bf16 %v2023_v36, %v2021_v35 }
 0x1a7   : > { %895 = vmatmul.mubr.bf16.gmra.mxu1 %v723_v37 }
 0x1a8   : > { %1237 = vmatprep.mubr.bf16.mxu1 %v2360_v56 }
 0x24f   : > { %v866_v51 = vpop.f32.mrf.mxu1 }
 0x250   : > { %v867_v28 = vadd.f32 %v866_v51, %v2681_v16  ;;  %v499_v51 = vld [vmem:[%s2606_s6 + $0x18] sm:$0xff] }
 0x251   : > { %v868_v52 = vpop.f32.mrf.mxu1 }
 0x252   : > { %v2659_v53 = vadd.f32 %v868_v52, %v2656_v50  ;;  %v1286_v52 = vmul.f32 %v867_v28, %v867_v28 }
 0x253   : > { %v870_v54 = vpop.f32.mrf.mxu1 }
 0x254   : > { %v905_v55 = vmul.f32 0.5, %v2659_v53  ;;  %v871_v21 = vadd.f32 %v870_v54, %v2681_v16 }
 0x255   : > { %v872_v57 = vpop.f32.mrf.mxu1 }
 0x256   : > { %v913_v58 = vmul.f32 1.442695, %v905_v55  ;;  %v2663_v59 = vadd.f32 %v872_v57, %v2656_v50  ;;  %v1287_v33 = vmul.f32 %v871_v21, %v871_v21 }
 0x257   : > { %v876_v60 = vpop.f32.mrf.mxu1 }
 0x258   : > { %v906_v61 = vmul.f32 0.5, %v2663_v59  ;;  %2024 = vpow2.f32 %v913_v58  ;;  %v877_v34 = vadd.f32 %v876_v60, %v2681_v16 }
 0x259   : > { %v878_v62 = vpop.f32.mrf.mxu1 }
 0x25a   : > { %v915_v63 = vmul.f32 1.442695, %v906_v61  ;;  %v2667_v0 = vadd.f32 %v878_v62, %v2656_v50  ;;  %v1288_v54 = vmul.f32 %v877_v34, %v877_v34 }
 0x25b   : > { %v880_v1 = vpop.f32.mrf.mxu1 }
 0x25c   : > { %2026 = vpow2.f32 %v915_v63  ;;  %v907_v2 = vmul.f32 0.5, %v2667_v0  ;;  %v881_v36 = vadd.f32 %v880_v1, %v2681_v16 }
 0x25d   : > { %v882_v3 = vpop.f32.mrf.mxu1 }
 0x25e   : > { %v917_v4 = vmul.f32 1.442695, %v907_v2  ;;  %v2671_v5 = vadd.f32 %v882_v3, %v2656_v50  ;;  %v1289_v58 = vmul.f32 %v881_v36, %v881_v36 }
 0x25f   : > { %v886_v6 = vpop.f32.mrf.mxu1 }
 0x260   : > { %2028 = vpow2.f32 %v917_v4  ;;  %v908_v7 = vmul.f32 0.5, %v2671_v5  ;;  %v887_v60 = vadd.f32 %v886_v6, %v2681_v16  ;;  %v500_v6 = vld [vmem:[%s2606_s6 + $0x20] sm:$0xff] }
 0x261   : > { %v888_v8 = vpop.f32.mrf.mxu1 }
 0x262   : > { %v919_v10 = vmul.f32 1.442695, %v908_v7  ;;  %v2676_v11 = vadd.f32 %v888_v8, %v2656_v50 }
 0x263   : > { %v890_v12 = vpop.f32.mrf.mxu1 }
 0x264   : > { %2030 = vpow2.f32 %v919_v10  ;;  %v909_v13 = vmul.f32 0.5, %v2676_v11 }
 0x265   : > { %v892_v14 = vpop.f32.mrf.mxu1  ;;  %v2025_v15 = vpop.eup %2024 }
 0x266   : > { %v921_v17 = vmul.f32 1.442695, %v909_v13  ;;  %v2684_v18 = vadd.f32 %v892_v14, %v2656_v50  ;;  %v929_v26 = vmul.f32 %v2025_v15, %v496_v19  ;;  %v1278_v42 = vmul.f32 %v2025_v15, %v2025_v15 }
 0x267   : > { %v2687_v20 = vpop.f32.mrf.mxu1  ;;  %v1290_v13 = vmul.f32 %v887_v60, %v887_v60  ;;  %v891_v14 = vadd.f32 %v890_v12, %v2681_v16 }
 0x268   : > { %2032 = vpow2.f32 %v921_v17  ;;  %v910_v22 = vmul.f32 0.5, %v2684_v18  ;;  %v937_v39 = vadd.f32 %v929_v26, %v867_v28  ;;  %v1294_v62 = vadd.f32 %v1286_v52, %v1278_v42 }
 0x269   : > { %v2027_v24 = vpop.eup %2026  ;;  %v898_v25 = vpop.f32.mrf.mxu1  ;;  %v1291_v28 = vmul.f32 %v891_v14, %v891_v14 }
 0x26a   : > { %v923_v27 = vmul.f32 1.442695, %v910_v22  ;;  %v1279_v29 = vmul.f32 %v2027_v24, %v2027_v24  ;;  %v2694_v30 = vadd.f32 %v898_v25, %v2656_v50  ;;  %v930_v32 = vmul.f32 %v2027_v24, %v497_v23  ;;  %v501_v23 = vld [vmem:[%s2606_s6 + $0x28] sm:$0xff] }
 0x26b   : > { %v2696_v31 = vpop.f32.mrf.mxu1  ;;  %v1751_v15 = vadd.f32 -1.0, %v1294_v62 }
 0x26c   : > { %2034 = vpow2.f32 %v923_v27  ;;  %v911_v37 = vmul.f32 0.5, %v2694_v30  ;;  %v938_v40 = vadd.f32 %v930_v32, %v871_v21  ;;  %v1295_v44 = vadd.f32 %v1287_v33, %v1279_v29 }
 0x26d   : > { %v2029_v35 = vpop.eup %2028  ;;  %v902_v38 = vpop.f32.mrf.mxu1  ;;  %v1310_v29 = vsub.f32 %v1751_v15, %v2659_v53 }
 0x26e   : > { %v1280_v43 = vmul.f32 %v2029_v35, %v2029_v35  ;;  %v925_v45 = vmul.f32 1.442695, %v911_v37  ;;  %v2703_v46 = vadd.f32 %v902_v38, %v2656_v50  ;;  %v945_v49 = vpack.c.bf16 %v938_v40, %v937_v39 }
 0x26f   : > { %v931_v55 = vmul.f32 %v2029_v35, %v498_v41  ;;  %v1752_v50 = vadd.f32 -1.0, %v1295_v44  ;;  %v901_v40 = vadd.f32 %v2696_v31, %v2681_v16  ;;  %v502_v41 = vld [vmem:[%s2606_s6 + $0x30] sm:$0xff]  ;;  %v1318_v42 = vmul.f32 0.5, %v1310_v29  ;;  %v1999_v29 = vld [vmem:[#allocation10 + $0x20] ss:$8 sps:$4 sm:$0xff]  }
 0x270   : > { %2036 = vpow2.f32 %v925_v45  ;;  %v912_v61 = vmul.f32 0.5, %v2703_v46  ;;  %1832 = vmatprep.mubr.bf16.mxu0 %v945_v49  ;;  %v1296_v63 = vadd.f32 %v1288_v54, %v1280_v43 }
 0x271   : > { %v2031_v57 = vpop.eup %2030  ;;  %v939_v7 = vadd.f32 %v931_v55, %v877_v34  ;;  %v1311_v22 = vsub.f32 %v1752_v50, %v2663_v59  ;;  %v1293_v31 = vmul.f32 %v901_v40, %v901_v40 }
 0x272   : > { %v1281_v1 = vmul.f32 %v2031_v57, %v2031_v57  ;;  %v932_v2 = vmul.f32 %v2031_v57, %v499_v51  ;;  %v927_v3 = vmul.f32 1.442695, %v912_v61  ;;  %v1753_v17 = vadd.f32 -1.0, %v1296_v63 }
 0x273   : > { %v1319_v34 = vmul.f32 0.5, %v1311_v22  ;;  %v1989_v22 = vld [vmem:[#allocation10 + $0x64] ss:$8 sps:$4 sm:$0xff]  }
 0x274   : > { %v1297_v4 = vadd.f32 %v1289_v58, %v1281_v1  ;;  %v940_v8 = vadd.f32 %v932_v2, %v881_v36  ;;  %2038 = vpow2.f32 %v927_v3  ;;  %v1312_v12 = vsub.f32 %v1753_v17, %v2667_v0 }
 0x275   : > { %v2033_v10 = vpop.eup %2032  ;;  %v897_v36 = vadd.f32 %v2687_v20, %v2681_v16  ;;  %v1502_v20 = vadd.f32 %v1319_v34, %v1318_v42  ;;  %v2005_v34 = vld [vmem:[#allocation10] ss:$8 sps:$4 sm:$0xff]  }
 0x276   : > { %v1282_v19 = vmul.f32 %v2033_v10, %v2033_v10  ;;  %v946_v21 = vpack.c.bf16 %v940_v8, %v939_v7  ;;  %v1754_v24 = vadd.f32 -1.0, %v1297_v4  ;;  %v933_v26 = vmul.f32 %v2033_v10, %v500_v6  ;;  %v1726_v42 = vld [vmem:[%s2879_s7] ss:$0 sm:$0xff] }
 0x277   : > { %v1320_v0 = vmul.f32 0.5, %v1312_v12  ;;  %v1292_v49 = vmul.f32 %v897_v36, %v897_v36  ;;  %v2004_v12 = vld [vmem:[#allocation10 + $0x14] ss:$8 sps:$4 sm:$0xff]  }
 0x278   : > { %v1298_v25 = vadd.f32 %v1290_v13, %v1282_v19  ;;  %1833 = vmatmul.mubr.bf16.vlgmr.msra.gmra.mxu0 %v946_v21  ;;  %v1313_v59 = vsub.f32 %v1754_v24, %v2671_v5  ;;  %v941_v38 = vadd.f32 %v933_v26, %v887_v60  ;;  %v503_v5 = vld [vmem:[%s2606_s6 + $0x38] sm:$0xff]  ;;  %v1993_v26 = vld [vmem:[#allocation10 + $0x40] ss:$8 sps:$4 sm:$0xff]  }
 0x279   : > { %v2035_v27 = vpop.eup %2034  ;;  %v1503_v16 = vadd.f32 %v1502_v20, %v1320_v0  ;;  %v1984_v19 = vld [vmem:[#allocation10 + $0x70] ss:$8 sps:$4 sm:$0xff]   ;;  %v1986_v21 = vld [vmem:[#allocation10 + $0x74] ss:$8 sps:$4 sm:$0xff]  }
 0x27a   : > { %v1283_v32 = vmul.f32 %v2035_v27, %v2035_v27  ;;  %v934_v33 = vmul.f32 %v2035_v27, %v501_v23  ;;  %v1755_v35 = vadd.f32 -1.0, %v1298_v25  ;;  %v1321_v52 = vmul.f32 0.5, %v1313_v59  ;;  %1205 = vmatprep.subr.bf16.mxu1 %v1986_v21  ;;  %v1992_v23 = vld [vmem:[#allocation10 + $0x54] ss:$8 sps:$4 sm:$0xff]   ;;  %v1990_v24 = vld [vmem:[#allocation10 + $0x50] ss:$8 sps:$4 sm:$0xff]  }
 0x27b   : > { %1206 = vmatpush1.bf16.msra.mxu1 %v1984_v19  ;;  %v1995_v25 = vld [vmem:[#allocation10 + $0x44] ss:$8 sps:$4 sm:$0xff]   ;;  %v1996_v27 = vld [vmem:[#allocation10 + $0x30] ss:$8 sps:$4 sm:$0xff]  }
 0x27c   : > { %v1299_v37 = vadd.f32 %v1291_v28, %v1283_v32  ;;  %v942_v39 = vadd.f32 %v934_v33, %v891_v14  ;;  %v1314_v45 = vsub.f32 %v1755_v35, %v2676_v11  ;;  %v1504_v1 = vadd.f32 %v1503_v16, %v1321_v52  ;;  %1207 = vmatprep.subr.bf16.mxu1 %v1989_v22  ;;  %v2001_v28 = vld [vmem:[#allocation10 + $0x24] ss:$8 sps:$4 sm:$0xff]   ;;  %v2002_v32 = vld [vmem:[#allocation10 + $0x10] ss:$8 sps:$4 sm:$0xff]  }
 0x27d   : > { %v2037_v53 = vpop.eup %2036  ;;  %v2007_v33 = vld [vmem:[#allocation10 + $0x4] ss:$8 sps:$4 sm:$0xff]  }
 0x27e   : > { %v1756_v43 = vadd.f32 -1.0, %v1299_v37  ;;  %v947_v44 = vpack.c.bf16 %v942_v39, %v941_v38  ;;  %v1284_v51 = vmul.f32 %v2037_v53, %v2037_v53  ;;  %v935_v54 = vmul.f32 %v2037_v53, %v502_v41 }
 0x27f   : > { %v1322_v60 = vmul.f32 0.5, %v1314_v45 }
 0x280   : > { %1836 = vmatprep.mubr.bf16.mxu0 %v947_v44  ;;  %v1315_v55 = vsub.f32 %v1756_v43, %v2684_v18  ;;  %v1300_v57 = vadd.f32 %v1292_v49, %v1284_v51  ;;  %v943_v2 = vadd.f32 %v935_v54, %v897_v36 }
 0x281   : > { %v2039_v58 = vpop.eup %2038  ;;  %v1505_v7 = vadd.f32 %v1504_v1, %v1322_v60 }
 0x282   : > { %v1757_v61 = vadd.f32 -1.0, %v1300_v57  ;;  %v936_v62 = vmul.f32 %v2039_v58, %v503_v5  ;;  %v1285_v63 = vmul.f32 %v2039_v58, %v2039_v58  ;;  %v1323_v11 = vmul.f32 0.5, %v1315_v55 }
 0x284   : > { %v1316_v50 = vsub.f32 %v1757_v61, %v2694_v30  ;;  %v944_v3 = vadd.f32 %v936_v62, %v901_v40  ;;  %v1301_v4 = vadd.f32 %v1293_v31, %v1285_v63  ;;  %v1506_v14 = vadd.f32 %v1505_v7, %v1323_v11  ;;  %v1987_v30 = vld [vmem:[#allocation10 + $0x60] ss:$8 sps:$4 sm:$0xff]  }
 0x285   : > { %1208 = vmatpush1.bf16.msra.mxu1 %v1987_v30 }
 0x286   : > { %v1324_v8 = vmul.f32 0.5, %v1316_v50  ;;  %v948_v10 = vpack.c.bf16 %v944_v3, %v943_v2  ;;  %v1758_v13 = vadd.f32 -1.0, %v1301_v4  ;;  %1209 = vmatprep.subr.bf16.mxu1 %v1992_v23 }
 0x288   : > { %1837 = vmatmul.mubr.bf16.gmra.mxu0 %v948_v10  ;;  %v1317_v18 = vsub.f32 %v1758_v13, %v2703_v46  ;;  %v1507_v15 = vadd.f32 %v1506_v14, %v1324_v8  ;;  %v1998_v46 = vld [vmem:[#allocation10 + $0x34] ss:$8 sps:$4 sm:$0xff]   ;;  %v1113_v8 = vld [vmem:[%s2881_s9] sm:$0x3] }
 0x289   : > { %1210 = vmatpush1.bf16.msra.mxu1 %v1990_v24  ;;  %v2736_v10 = vrot.slane %v1113_v8, %v744_v9  ;;  %v2740_v13 = vrot.slane %v1113_v8, %v748_v48 }
 0x28a   : > { %v1325_v6 = vmul.f32 0.5, %v1317_v18  ;;  %1211 = vmatprep.subr.bf16.mxu1 %v1995_v25 }
 0x28c   : > { %v1508_v17 = vadd.f32 %v1507_v15, %v1325_v6 }
 0x28d   : > { %1212 = vmatpush1.bf16.msra.mxu1 %v1993_v26 }
 0x28e   : > { %1509 = vadd.xlane.f32.xlu0 %v1508_v17  ;;  %1213 = vmatprep.subr.bf16.mxu1 %v1998_v46 }
 0x291   : > { %1214 = vmatpush1.bf16.msra.mxu1 %v1996_v27 }
 0x292   : > { %1215 = vmatprep.subr.bf16.mxu1 %v2001_v28 }
 0x295   : > { %1216 = vmatpush1.bf16.msra.mxu1 %v1999_v29 }
 0x296   : > { %1217 = vmatprep.subr.bf16.mxu1 %v2004_v12 }
 0x299   : > { %1218 = vmatpush1.bf16.msra.mxu1 %v2002_v32 }
 0x29a   : > { %1219 = vmatprep.subr.bf16.mxu1 %v2007_v33 }
 0x29d   : > { %1220 = vmatpush1.bf16.msra.mxu1 %v2005_v34 }
 0x317   : > { %v1510_v35 = vpop.xlane.xlu0 %1509 }
 0x318   : > { %v1511_v36 = vrot.slane %v1510_v35, 4 }
 0x31a   : > { %v1512_v59 = vadd.f32 %v1511_v36, %v1510_v35 }
 0x31c   : > { %v1513_v37 = vrot.slane %v1512_v59, 2 }
 0x31e   : > { %v1514_v38 = vadd.f32 %v1513_v37, %v1512_v59 }
 0x320   : > { %v1515_v39 = vrot.slane %v1514_v38, 1 }
 0x322   : > { %v1516_v40 = vadd.f32 %v1515_v39, %v1514_v38 }
 0x324   : > { %1840 = vpush %v1516_v40 }
 0x338   : > { %v1834_v41 = vpop.f32.mrf.mxu0 }
 0x339   : > { %v1063_v51 = vadd.f32 %v1834_v41, %v1726_v42 }
 0x33a   : > { %v1054_v53 = vpop.f32.mrf.mxu0 }
 0x33b   : > { %v1055_v0 = vadd.f32 %v1726_v42, %v1054_v53 }
 0x33c   : > { %v1835_v43 = vpop.f32.mrf.mxu0 }
 0x33d   : > { %2040 = vtanh.f32 %v1055_v0  ;;  %v1066_v49 = vadd.f32 %v1835_v43, %v1726_v42 }
 0x33e   : > { %v1057_v44 = vpop.f32.mrf.mxu0 }
 0x33f   : > { %v1058_v45 = vadd.f32 %v1726_v42, %v1057_v44 }
 0x341   : > { %2042 = vtanh.f32 %v1058_v45 }
 0x342   : > { %2044 = vtanh.f32 %v1066_v49 }
 0x343   : > { %2046 = vtanh.f32 %v1063_v51 }
 0x348   : > { %v1838_v20 = vpop.f32.mrf.mxu0 }
 0x349   : > { %v1079_v63 = vadd.f32 %v1838_v20, %v1726_v42 }
 0x34a   : > { %v1070_v52 = vpop.f32.mrf.mxu0  ;;  %v2041_v5 = vpop.eup %2040 }
 0x34b   : > { %v1071_v54 = vadd.f32 %v1726_v42, %v1070_v52 }
 0x34c   : > { %v1839_v55 = vpop.f32.mrf.mxu0 }
 0x34d   : > { %2048 = vtanh.f32 %v1071_v54  ;;  %v1082_v61 = vadd.f32 %v1839_v55, %v1726_v42 }
 0x34e   : > { %v2043_v57 = vpop.eup %2042  ;;  %v1073_v58 = vpop.f32.mrf.mxu0 }
 0x34f   : > { %v1093_v16 = vpack.c.bf16 %v2043_v57, %v2041_v5  ;;  %v1074_v31 = vadd.f32 %v1726_v42, %v1073_v58  ;;  %v2045_v60 = vpop.eup %2044 }
 0x350   : > { %v2047_v62 = vpop.eup %2046 }
 0x351   : > { %1238 = vmatmul.mubr.bf16.vlgmr.msra.gmra.mxu1 %v1093_v16  ;;  %2050 = vtanh.f32 %v1074_v31  ;;  %v1094_v1 = vpack.c.bf16 %v2045_v60, %v2047_v62 }
 0x352   : > { %1247 = vmatprep.mubr.bf16.mxu1 %v2360_v56  ;;  %2052 = vtanh.f32 %v1082_v61 }
 0x353   : > { %2054 = vtanh.f32 %v1079_v63 }
 0x355   : > { %s1841_s28 = spop %1840 }
 0x359   : > { %1248 = vmatmul.mubr.bf16.gmra.mxu1 %v1094_v1 }
 0x35a   : > { %1257 = vmatprep.mubr.bf16.mxu1 %v2360_v56  ;;  %v2049_v2 = vpop.eup %2048 }
 0x35e   : > { %v2051_v11 = vpop.eup %2050 }
 0x35f   : > { %v1095_v50 = vpack.c.bf16 %v2051_v11, %v2049_v2  ;;  %v2053_v3 = vpop.eup %2052 }
 0x360   : > { %v2055_v4 = vpop.eup %2054 }
 0x361   : > { %1258 = vmatmul.mubr.bf16.gmra.mxu1 %v1095_v50  ;;  %v1096_v7 = vpack.c.bf16 %v2053_v3, %v2055_v4 }
 0x362   : > { %1267 = vmatprep.mubr.bf16.mxu1 %v2360_v56 }
 0x369   : > { %1268 = vmatmul.mubr.bf16.gmra.mxu1 %v1096_v7 }
 0x411   : > { %v1239_v18 = vpop.f32.mrf.mxu1 }
 0x412   : > { %v2743_v14 = vadd.f32 %v1239_v18, %v2736_v10 }
 0x413   : > { %v1241_v56 = vpop.f32.mrf.mxu1 }
 0x414   : > { %v1342_v6 = vand.u32 2147483647, %v2743_v14  ;;  %v2747_v15 = vadd.f32 %v1241_v56, %v2740_v13 }
 0x415   : > { %v1243_v17 = vpop.f32.mrf.mxu1 }
 0x416   : > { %v1358_v19 = vsub.f32 0.0, %v1342_v6  ;;  %v1343_v21 = vand.u32 2147483647, %v2747_v15  ;;  %v2751_v9 = vadd.f32 %v1243_v17, %v2736_v10 }
 0x417   : > { %v1245_v47 = vpop.f32.mrf.mxu1 }
 0x418   : > { %v1374_v48 = vmul.f32 1.442695, %v1358_v19  ;;  %v1359_v22 = vsub.f32 0.0, %v1343_v21  ;;  %v2754_v30 = vadd.f32 %v1245_v47, %v2740_v13  ;;  %v1344_v23 = vand.u32 2147483647, %v2751_v9 }
 0x419   : > { %v1249_v24 = vpop.f32.mrf.mxu1 }
 0x41a   : > { %2056 = vpow2.f32 %v1374_v48  ;;  %v1376_v25 = vmul.f32 1.442695, %v1359_v22  ;;  %v1345_v26 = vand.u32 2147483647, %v2754_v30  ;;  %v1360_v46 = vsub.f32 0.0, %v1344_v23 }
 0x41b   : > { %v2759_v27 = vadd.f32 %v1249_v24, %v2736_v10  ;;  %v1251_v28 = vpop.f32.mrf.mxu1 }
 0x41c   : > { %2058 = vpow2.f32 %v1376_v25  ;;  %v1361_v29 = vsub.f32 0.0, %v1345_v26  ;;  %v2762_v12 = vadd.f32 %v1251_v28, %v2740_v13  ;;  %v1378_v32 = vmul.f32 1.442695, %v1360_v46 }
 0x41d   : > { %v1346_v33 = vand.u32 2147483647, %v2759_v27  ;;  %v1253_v34 = vpop.f32.mrf.mxu1 }
 0x41e   : > { %v1380_v35 = vmul.f32 1.442695, %v1361_v29  ;;  %v1347_v36 = vand.u32 2147483647, %v2762_v12  ;;  %2060 = vpow2.f32 %v1378_v32  ;;  %v2767_v37 = vadd.f32 %v1253_v34, %v2736_v10 }
 0x41f   : > { %v1362_v59 = vsub.f32 0.0, %v1346_v33  ;;  %v1255_v38 = vpop.f32.mrf.mxu1 }
 0x420   : > { %2062 = vpow2.f32 %v1380_v35  ;;  %v1363_v39 = vsub.f32 0.0, %v1347_v36  ;;  %v2770_v40 = vadd.f32 %v1255_v38, %v2740_v13  ;;  %v1348_v53 = vand.u32 2147483647, %v2767_v37 }
 0x421   : > { %v1382_v41 = vmul.f32 1.442695, %v1362_v59  ;;  %v1259_v43 = vpop.f32.mrf.mxu1 }
 0x422   : > { %v1384_v42 = vmul.f32 1.442695, %v1363_v39  ;;  %v1349_v0 = vand.u32 2147483647, %v2770_v40  ;;  %v1364_v44 = vsub.f32 0.0, %v1348_v53  ;;  %v2775_v45 = vadd.f32 %v1259_v43, %v2736_v10 }
 0x423   : > { %2064 = vpow2.f32 %v1382_v41  ;;  %v1261_v51 = vpop.f32.mrf.mxu1 }
 0x424   : > { %2066 = vpow2.f32 %v1384_v42  ;;  %v1365_v49 = vsub.f32 0.0, %v1349_v0  ;;  %v1386_v20 = vmul.f32 1.442695, %v1364_v44  ;;  %v1350_v52 = vand.u32 2147483647, %v2775_v45 }
 0x425   : > { %v2779_v54 = vadd.f32 %v1261_v51, %v2740_v13  ;;  %v1263_v55 = vpop.f32.mrf.mxu1 }
 0x426   : > { %v1388_v5 = vmul.f32 1.442695, %v1365_v49  ;;  %2068 = vpow2.f32 %v1386_v20  ;;  %v1366_v58 = vsub.f32 0.0, %v1350_v52  ;;  %v2782_v16 = vadd.f32 %v1263_v55, %v2736_v10 }
 0x427   : > { %v2057_v57 = vpop.eup %2056  ;;  %v1351_v60 = vand.u32 2147483647, %v2779_v54  ;;  %v1265_v61 = vpop.f32.mrf.mxu1  ;;  %v1326_v52 = vmax.f32 %v2743_v14, 0.0 }
 0x428   : > { %v1406_v31 = vadd.f32 1.0, %v2057_v57  ;;  %2070 = vpow2.f32 %v1388_v5  ;;  %v1390_v63 = vmul.f32 1.442695, %v1366_v58  ;;  %v1352_v1 = vand.u32 2147483647, %v2782_v16 }
 0x429   : > { %v2059_v62 = vpop.eup %2058  ;;  %v1367_v11 = vsub.f32 0.0, %v1351_v60  ;;  %v1269_v50 = vpop.f32.mrf.mxu1  ;;  %v2787_v4 = vadd.f32 %v1265_v61, %v2740_v13 }
 0x42a   : > { %2072 = vlog2.f32 %v1406_v31  ;;  %v1407_v2 = vadd.f32 1.0, %v2059_v62  ;;  %v1368_v3 = vsub.f32 0.0, %v1352_v1  ;;  %v2790_v7 = vadd.f32 %v1269_v50, %v2736_v10  ;;  %v2120_v1 = vld [vmem:[%s2599_s16] sm:$0xff]  ;;  %v2121_v50 = vld [vmem:[%s2599_s16 + $0x8] sm:$0xff] }
 0x42b   : > { %2074 = vpow2.f32 %v1390_v63  ;;  %v2061_v8 = vpop.eup %2060  ;;  %v1392_v18 = vmul.f32 1.442695, %v1367_v11  ;;  %v1271_v56 = vpop.f32.mrf.mxu1  ;;  %v1353_v21 = vand.u32 2147483647, %v2787_v4  ;;  %v1327_v31 = vmax.f32 %v2747_v15, 0.0 }
 0x42c   : > { %2076 = vlog2.f32 %v1407_v2  ;;  %v1408_v17 = vadd.f32 1.0, %v2061_v8  ;;  %v1394_v19 = vmul.f32 1.442695, %v1368_v3  ;;  %v1354_v23 = vand.u32 2147483647, %v2790_v7 }
 0x42d   : > { %v2063_v6 = vpop.eup %2062  ;;  %2078 = vpow2.f32 %v1392_v18  ;;  %v1273_v48 = vpop.f32.mrf.mxu1  ;;  %v1369_v22 = vsub.f32 0.0, %v1353_v21  ;;  %v2795_v25 = vadd.f32 %v1271_v56, %v2740_v13  ;;  %v1470_v2 = vmul.f32 %v2120_v1, %v2743_v14 }
 0x42e   : > { %v1409_v47 = vadd.f32 1.0, %v2063_v6  ;;  %2080 = vlog2.f32 %v1408_v17  ;;  %v2798_v26 = vadd.f32 %v1273_v48, %v2736_v10  ;;  %v1370_v32 = vsub.f32 0.0, %v1354_v23 }
 0x42f   : > { %v1396_v29 = vmul.f32 1.442695, %v1369_v22  ;;  %v1275_v33 = vpop.f32.mrf.mxu1  ;;  %v1355_v35 = vand.u32 2147483647, %v2795_v25  ;;  %v1471_v3 = vmul.f32 %v2121_v50, %v2747_v15  ;;  %v1328_v56 = vmax.f32 %v2751_v9, 0.0  ;;  %v2122_v22 = vld [vmem:[%s2599_s16 + $0x10] sm:$0xff] }
 0x430   : > { %v2065_v24 = vpop.eup %2064  ;;  %2082 = vlog2.f32 %v1409_v47  ;;  %v1398_v36 = vmul.f32 1.442695, %v1370_v32  ;;  %v1356_v59 = vand.u32 2147483647, %v2798_v26  ;;  %v2803_v41 = vadd.f32 %v1275_v33, %v2740_v13 }
 0x431   : > { %v2067_v46 = vpop.eup %2066  ;;  %v1410_v28 = vadd.f32 1.0, %v2065_v24  ;;  %2084 = vpow2.f32 %v1394_v19  ;;  %v1371_v39 = vsub.f32 0.0, %v1355_v35  ;;  %v1329_v17 = vmax.f32 %v2754_v30, 0.0 }
 0x432   : > { %v1411_v34 = vadd.f32 1.0, %v2067_v46  ;;  %v1372_v42 = vsub.f32 0.0, %v1356_v59  ;;  %v1357_v51 = vand.u32 2147483647, %v2803_v41  ;;  %v1472_v23 = vmul.f32 %v2122_v22, %v2751_v9 }
 0x433   : > { %2086 = vlog2.f32 %v1410_v28  ;;  %v2069_v38 = vpop.eup %2068  ;;  %v1400_v43 = vmul.f32 1.442695, %v1371_v39  ;;  %v1330_v35 = vmax.f32 %v2759_v27, 0.0  ;;  %v1331_v39 = vmax.f32 %v2762_v12, 0.0 }
 0x434   : > { %2088 = vlog2.f32 %v1411_v34  ;;  %v1412_v53 = vadd.f32 1.0, %v2069_v38  ;;  %v1402_v49 = vmul.f32 1.442695, %v1372_v42  ;;  %v1373_v57 = vsub.f32 0.0, %v1357_v51  ;;  %v2125_v51 = vld [vmem:[%s2599_s16 + $0x28] sm:$0xff] }
 0x435   : > { %v2071_v10 = vpop.eup %2070  ;;  %2090 = vpow2.f32 %v1396_v29  ;;  %v2123_v29 = vld [vmem:[%s2599_s16 + $0x18] sm:$0xff] }
 0x436   : > { %v1413_v0 = vadd.f32 1.0, %v2071_v10  ;;  %2092 = vpow2.f32 %v1398_v36  ;;  %v1404_v62 = vmul.f32 1.442695, %v1373_v57  ;;  %v1473_v32 = vmul.f32 %v2123_v29, %v2754_v30 }
 0x437   : > { %v2073_v44 = vpop.eup %2072  ;;  %2094 = vlog2.f32 %v1412_v53 }
 0x438   : > { %v2075_v20 = vpop.eup %2074  ;;  %v1423_v5 = vmul.f32 0.6931472, %v2073_v44  ;;  %2096 = vlog2.f32 %v1413_v0  ;;  %v2124_v0 = vld [vmem:[%s2599_s16 + $0x20] sm:$0xff] }
 0x439   : > { %v2077_v13 = vpop.eup %2076  ;;  %v1414_v55 = vadd.f32 1.0, %v2075_v20  ;;  %2098 = vpow2.f32 %v1400_v43  ;;  %v1474_v43 = vmul.f32 %v2124_v0, %v2759_v27  ;;  %v1475_v20 = vmul.f32 %v2125_v51, %v2762_v12  ;;  %v2126_v12 = vld [vmem:[%s2599_s16 + $0x30] sm:$0xff] }
 0x43a   : > { %v1454_v58 = vadd.f32 %v1423_v5, %v1326_v52  ;;  %v1425_v60 = vmul.f32 0.6931472, %v2077_v13  ;;  %2100 = vpow2.f32 %v1402_v49  ;;  %v2079_v61 = vpop.eup %2078  ;;  %v1332_v52 = vmax.f32 %v2767_v37, 0.0 }
 0x43b   : > { %2102 = vlog2.f32 %v1414_v55  ;;  %v2081_v63 = vpop.eup %2080  ;;  %v1415_v8 = vadd.f32 1.0, %v2079_v61  ;;  %v1333_v27 = vmax.f32 %v2770_v40, 0.0 }
 0x43c   : > { %v1455_v11 = vadd.f32 %v1425_v60, %v1327_v31  ;;  %v1427_v6 = vmul.f32 0.6931472, %v2081_v63  ;;  %2104 = vpow2.f32 %v1404_v62  ;;  %v1486_v21 = vsub.f32 %v1470_v2, %v1454_v58 }
 0x43d   : > { %v2083_v18 = vpop.eup %2082  ;;  %2106 = vlog2.f32 %v1415_v8  ;;  %v1476_v2 = vmul.f32 %v2126_v12, %v2767_v37  ;;  %v2127_v8 = vld [vmem:[%s2599_s16 + $0x38] sm:$0xff] }
 0x43e   : > { %v2085_v19 = vpop.eup %2084  ;;  %v1487_v47 = vsub.f32 %v1471_v3, %v1455_v11  ;;  %v1429_v48 = vmul.f32 0.6931472, %v2083_v18  ;;  %v1456_v14 = vadd.f32 %v1427_v6, %v1328_v56  ;;  %v1477_v18 = vmul.f32 %v2127_v8, %v2770_v40 }
 0x43f   : > { %v1416_v24 = vadd.f32 1.0, %v2085_v19  ;;  %v1334_v56 = vmax.f32 %v2775_v45, 0.0  ;;  %v1335_v40 = vmax.f32 %v2779_v54, 0.0 }
 0x440   : > { %v2087_v15 = vpop.eup %2086  ;;  %v1518_v46 = vadd.f32 %v1487_v47, %v1486_v21  ;;  %v1457_v28 = vadd.f32 %v1429_v48, %v1329_v17  ;;  %v1488_v34 = vsub.f32 %v1472_v23, %v1456_v14  ;;  %v2128_v23 = vld [vmem:[%s2599_s16 + $0x40] sm:$0xff] }
 0x441   : > { %v2089_v33 = vpop.eup %2088  ;;  %v1431_v36 = vmul.f32 0.6931472, %v2087_v15  ;;  %2108 = vlog2.f32 %v1416_v24  ;;  %v1478_v24 = vmul.f32 %v2128_v23, %v2775_v45 }
 0x442   : > { %v2091_v59 = vpop.eup %2090  ;;  %v1489_v38 = vsub.f32 %v1473_v32, %v1457_v28  ;;  %v1433_v9 = vmul.f32 0.6931472, %v2089_v33  ;;  %v1519_v53 = vadd.f32 %v1518_v46, %v1488_v34  ;;  %v2129_v34 = vld [vmem:[%s2599_s16 + $0x48] sm:$0xff] }
 0x443   : > { %v2093_v10 = vpop.eup %2092  ;;  %v1458_v42 = vadd.f32 %v1431_v36, %v1330_v35  ;;  %v1417_v44 = vadd.f32 1.0, %v2091_v59  ;;  %v1479_v35 = vmul.f32 %v2129_v34, %v2779_v54  ;;  %v1336_v59 = vmax.f32 %v2782_v16, 0.0 }
 0x444   : > { %v2095_v30 = vpop.eup %2094  ;;  %v1459_v49 = vadd.f32 %v1433_v9, %v1331_v39  ;;  %v1418_v5 = vadd.f32 1.0, %v2093_v10  ;;  %v1520_v55 = vadd.f32 %v1519_v53, %v1489_v38  ;;  %v2130_v9 = vld [vmem:[%s2599_s16 + $0x50] sm:$0xff]  ;;  %v1338_v54 = vmax.f32 %v2790_v7, 0.0 }
 0x445   : > { %v2097_v13 = vpop.eup %2096  ;;  %v1490_v57 = vsub.f32 %v1474_v43, %v1458_v42  ;;  %v1435_v58 = vmul.f32 0.6931472, %v2095_v30  ;;  %2110 = vlog2.f32 %v1417_v44  ;;  %v1480_v10 = vmul.f32 %v2130_v9, %v2782_v16  ;;  %v2132_v16 = vld [vmem:[%s2599_s16 + $0x60] sm:$0xff] }
 0x446   : > { %v2099_v31 = vpop.eup %2098  ;;  %v1491_v60 = vsub.f32 %v1475_v20, %v1459_v49  ;;  %v1437_v61 = vmul.f32 0.6931472, %v2097_v13  ;;  %2112 = vlog2.f32 %v1418_v5  ;;  %v1337_v44 = vmax.f32 %v2787_v4, 0.0 }
 0x447   : > { %v2101_v62 = vpop.eup %2100  ;;  %v1521_v63 = vadd.f32 %v1520_v55, %v1490_v57  ;;  %v1460_v1 = vadd.f32 %v1435_v58, %v1332_v52  ;;  %v1419_v11 = vadd.f32 1.0, %v2099_v31  ;;  %v2131_v52 = vld [vmem:[%s2599_s16 + $0x58] sm:$0xff]  ;;  %v1482_v57 = vmul.f32 %v2132_v16, %v2790_v7 }
 0x448   : > { %v2103_v50 = vpop.eup %2102  ;;  %v1461_v3 = vadd.f32 %v1437_v61, %v1333_v27  ;;  %v1420_v6 = vadd.f32 1.0, %v2101_v62  ;;  %v1481_v5 = vmul.f32 %v2131_v52, %v2787_v4  ;;  %v1340_v62 = vmax.f32 %v2798_v26, 0.0 }
 0x449   : > { %v1522_v17 = vadd.f32 %v1521_v63, %v1491_v60  ;;  %v1492_v19 = vsub.f32 %v1476_v2, %v1460_v1  ;;  %v1439_v21 = vmul.f32 0.6931472, %v2103_v50  ;;  %2114 = vlog2.f32 %v1419_v11  ;;  %v2105_v47 = vpop.eup %2104  ;;  %v2133_v2 = vld [vmem:[%s2599_s16 + $0x68] sm:$0xff] }
 0x44a   : > { %v1493_v48 = vsub.f32 %v1477_v18, %v1461_v3  ;;  %2116 = vlog2.f32 %v1420_v6  ;;  %v2107_v14 = vpop.eup %2106  ;;  %v1421_v15 = vadd.f32 1.0, %v2105_v47  ;;  %v1339_v60 = vmax.f32 %v2795_v25, 0.0  ;;  %v2134_v3 = vld [vmem:[%s2599_s16 + $0x70] sm:$0xff] }
 0x44b   : > { %v1523_v37 = vadd.f32 %v1522_v17, %v1492_v19  ;;  %v1462_v22 = vadd.f32 %v1439_v21, %v1334_v56  ;;  %v1441_v46 = vmul.f32 0.6931472, %v2107_v14  ;;  %v1483_v4 = vmul.f32 %v2133_v2, %v2795_v25  ;;  %v2135_v19 = vld [vmem:[%s2599_s16 + $0x78] sm:$0xff] }
 0x44c   : > { %2118 = vlog2.f32 %v1421_v15  ;;  %v1484_v7 = vmul.f32 %v2134_v3, %v2798_v26  ;;  %v1341_v18 = vmax.f32 %v2803_v41, 0.0  ;;  %v1485_v21 = vmul.f32 %v2135_v19, %v2803_v41 }
 0x44d   : > { %v1524_v28 = vadd.f32 %v1523_v37, %v1493_v48  ;;  %v1494_v29 = vsub.f32 %v1478_v24, %v1462_v22  ;;  %v1463_v33 = vadd.f32 %v1441_v46, %v1335_v40 }
 0x44e   : > { %v2109_v32 = vpop.eup %2108 }
 0x44f   : > { %v1525_v36 = vadd.f32 %v1524_v28, %v1494_v29  ;;  %v1443_v38 = vmul.f32 0.6931472, %v2109_v32  ;;  %v1495_v39 = vsub.f32 %v1479_v35, %v1463_v33 }
 0x451   : > { %v1464_v45 = vadd.f32 %v1443_v38, %v1336_v59  ;;  %v1526_v42 = vadd.f32 %v1525_v36, %v1495_v39 }
 0x452   : > { %v2111_v53 = vpop.eup %2110 }
 0x453   : > { %v2113_v0 = vpop.eup %2112  ;;  %v1496_v43 = vsub.f32 %v1480_v10, %v1464_v45  ;;  %v1445_v30 = vmul.f32 0.6931472, %v2111_v53 }
 0x454   : > { %v1447_v49 = vmul.f32 0.6931472, %v2113_v0 }
 0x455   : > { %v1527_v51 = vadd.f32 %v1526_v42, %v1496_v43  ;;  %v1465_v20 = vadd.f32 %v1445_v30, %v1337_v44 }
 0x456   : > { %v2115_v13 = vpop.eup %2114  ;;  %v1466_v55 = vadd.f32 %v1447_v49, %v1338_v54 }
 0x457   : > { %v2117_v58 = vpop.eup %2116  ;;  %v1497_v31 = vsub.f32 %v1481_v5, %v1465_v20  ;;  %v1449_v27 = vmul.f32 0.6931472, %v2115_v13 }
 0x458   : > { %v1498_v61 = vsub.f32 %v1482_v57, %v1466_v55  ;;  %v1451_v63 = vmul.f32 0.6931472, %v2117_v58 }
 0x459   : > { %v1528_v1 = vadd.f32 %v1527_v51, %v1497_v31  ;;  %v1467_v12 = vadd.f32 %v1449_v27, %v1339_v60  ;;  %v2119_v11 = vpop.eup %2118 }
 0x45a   : > { %v1468_v50 = vadd.f32 %v1451_v63, %v1340_v62  ;;  %v1453_v56 = vmul.f32 0.6931472, %v2119_v11 }
 0x45b   : > { %v1499_v8 = vsub.f32 %v1483_v4, %v1467_v12  ;;  %v1529_v6 = vadd.f32 %v1528_v1, %v1498_v61 }
 0x45c   : > { %v1500_v17 = vsub.f32 %v1484_v7, %v1468_v50  ;;  %v1469_v47 = vadd.f32 %v1453_v56, %v1341_v18 }
 0x45d   : > { %v1530_v48 = vadd.f32 %v1529_v6, %v1499_v8 }
 0x45e   : > { %v1501_v14 = vsub.f32 %v1485_v21, %v1469_v47 }
 0x45f   : > { %v1531_v25 = vadd.f32 %v1530_v48, %v1500_v17 }
 0x461   : > { %v1532_v37 = vadd.f32 %v1531_v25, %v1501_v14 }
 0x463   : > { %1533 = vadd.xlane.f32.xlu0 %v1532_v37 }
 0x4ec   : > { %v1534_v22 = vpop.xlane.xlu0 %1533 }
 0x4ed   : > { %v1535_v23 = vrot.slane %v1534_v22, 4 }
 0x4ef   : > { %v1536_v26 = vadd.f32 %v1535_v23, %v1534_v22 }
 0x4f1   : > { %v1537_v24 = vrot.slane %v1536_v26, 2 }
 0x4f3   : > { %v1538_v15 = vadd.f32 %v1537_v24, %v1536_v26 }
 0x4f5   : > { %v1539_v40 = vrot.slane %v1538_v15, 1 }
 0x4f7   : > { %v1540_v46 = vadd.f32 %v1539_v40, %v1538_v15 }
 0x4f9   : > { %1842 = vpush %v1540_v46 }
 0x52a   : > { %s1843_s8 = spop %1842 }
 0x52b   : > { %s1542_s12 = ssub.f32 %s1841_s28, %s1843_s8 }
 0x52d   : > { %v1543_v41 = vstv %s1542_s12 }
 0x52e   : > { %1544 = vst [vmem:[%s478_s24] sm:$0xff] %v1543_v41 }
 0x52f PF: > { %p25_p0 = scmp.ge.s32.totalorder %s2506_s26, 4   ;;  %s2911_s13 = smov %s2338_s14 }
 0x530   : > { %s2912_s14 = smov %s2342_s15  ;;  %s2913_s15 = smov %s2515_s23 }
 0x531   : > { %s2914_s16 = smov %s2506_s26  ;;  %27 = sbr.rel (!%p25_p0) target bundleno = 13 (0xd), region = 129 }
 0x536   :  { %1564 = vsyncpa [#allocation3], 1 }
 0x537   :  { %1566 = vsyncpa [#allocation3 + $0x1], 1 }
 0x538   :  { %1567 = vsyncpa [#allocation5], 1 }
 0x539   :  { %1569 = vsyncpa [#allocation5 + $0x1], 1 }
 0x53a   :  { %1570 = vsyncpa [#allocation8], 1 }
 0x53b   :  { %1571 = vsyncpa [#allocation11], 1 }

</bundles_post_ra>
